<compile_context>
chip_gen: v7x
topology: tpu7x:2x2x1
jax: 0.10.0
libtpu: 0.0.40
codegen_flags: <defaults>
</compile_context>

<pallas_src>
import functools

import jax
import jax.numpy as jnp
from jax.experimental import pallas as pl
from jax.experimental.pallas import tpu as pltpu

# logical (PyTorch) dims
D_IN, D_H, D_Z = 784, 400, 40
# lane-aligned (padded) dims: multiples of 128
P_IN, P_H, P_Z = 896, 512, 128


def _round_up(n, m):
    return ((n + m - 1) // m) * m


def _vae_kernel(x_ref, w1_ref, b1_ref, wh_ref, bh_ref, w3_ref, b3_ref,
                w4_ref, b4_ref, eps_ref,
                recon_ref, heads_ref):
    # ---- encode: h1 = relu(x @ W1 + b1) --------------------------------
    # x / weights are bf16 (MXU operands); accumulate + elementwise in f32.
    h1 = jnp.dot(x_ref[...], w1_ref[...],
                 preferred_element_type=jnp.float32) + b1_ref[...]
    h1 = jnp.maximum(h1, 0.0)                                  # (TM, P_H) f32

    # ---- fused latent heads: [mu | logvar] = h1 @ W_heads + b_heads ----
    heads = jnp.dot(h1.astype(jnp.bfloat16), wh_ref[...],
                    preferred_element_type=jnp.float32) + bh_ref[...]
    mu = heads[:, :P_Z]                                        # (TM, P_Z) f32
    logvar = heads[:, P_Z:]                                    # (TM, P_Z) f32

    # ---- reparameterize: z = mu + eps * exp(0.5 * logvar) (f32, EUP) ---
    # padded lanes: mu = 0, eps = 0  =>  z = 0 (and W3 pad rows are 0 anyway)
    z = mu + eps_ref[...] * jnp.exp(0.5 * logvar)              # (TM, P_Z) f32

    # ---- decode: h3 = relu(z @ W3 + b3); recon = sigmoid(h3 @ W4 + b4) -
    h3 = jnp.dot(z.astype(jnp.bfloat16), w3_ref[...],
                 preferred_element_type=jnp.float32) + b3_ref[...]
    h3 = jnp.maximum(h3, 0.0)                                  # (TM, P_H) f32
    logits = jnp.dot(h3.astype(jnp.bfloat16), w4_ref[...],
                     preferred_element_type=jnp.float32) + b4_ref[...]

    # sigmoid(x) == 0.5 * tanh(0.5*x) + 0.5  (single EUP push per element)
    recon = 0.5 * jnp.tanh(0.5 * logits) + 0.5
    recon_ref[...] = recon.astype(recon_ref.dtype)             # bf16 store
    heads_ref[...] = heads                                     # [mu | logvar] f32


def pack_params(params):
    """Pad + bf16-cast weights, fuse fc21/fc22 into one head matrix.

    Call ONCE and reuse the result across forward calls (do not re-pack per
    call: it costs a full read/write of the weights each time).
    """
    (w1, b1, w21, b21, w22, b22, w3, b3, w4, b4) = params

    w1p = jnp.zeros((P_IN, P_H), jnp.bfloat16).at[:D_IN, :D_H].set(
        w1.astype(jnp.bfloat16))
    b1p = jnp.zeros((1, P_H), jnp.float32).at[0, :D_H].set(b1)

    whp = jnp.zeros((P_H, 2 * P_Z), jnp.bfloat16)
    whp = whp.at[:D_H, :D_Z].set(w21.astype(jnp.bfloat16))
    whp = whp.at[:D_H, P_Z:P_Z + D_Z].set(w22.astype(jnp.bfloat16))
    bhp = jnp.zeros((1, 2 * P_Z), jnp.float32)
    bhp = bhp.at[0, :D_Z].set(b21).at[0, P_Z:P_Z + D_Z].set(b22)

    w3p = jnp.zeros((P_Z, P_H), jnp.bfloat16).at[:D_Z, :D_H].set(
        w3.astype(jnp.bfloat16))
    b3p = jnp.zeros((1, P_H), jnp.float32).at[0, :D_H].set(b3)

    w4p = jnp.zeros((P_H, P_IN), jnp.bfloat16).at[:D_H, :D_IN].set(
        w4.astype(jnp.bfloat16))
    b4p = jnp.zeros((1, P_IN), jnp.float32).at[0, :D_IN].set(b4)

    return (w1p, b1p, whp, bhp, w3p, b3p, w4p, b4p)


def _dim_semantics(num_tiles):
    """Use CORE_PARALLEL on v7x (2 TensorCores) when there is work for both."""
    try:
        kind = jax.devices()[0].device_kind.lower()
        if "v7" in kind and num_tiles >= 2 and num_tiles % 2 == 0:
            return (pltpu.CORE_PARALLEL,)
    except Exception:
        pass
    return ("parallel",)


@functools.partial(jax.jit, static_argnames=("tm",))
def vae_forward(x, packed_params, eps, *, tm=512):
    """x: (B, 1, 28, 28) or (B, 784); eps: (B, 40) standard-normal noise.

    packed_params: result of pack_params(params), computed once.
    Returns (recon (B, 784), mu (B, 40), logvar (B, 40)) in float32, matching
    VAE.forward of the PyTorch module (eps passed explicitly).
    """
    B = x.shape[0]
    x2d = x.reshape(B, D_IN)

    # Batch tile: 512 by default (multiple of 256 for the 256-wide MXU on
    # v6e/v7x, amortizes the ~0.35us per-grid-step overhead). Tiny batches use
    # one full (8-aligned) tile.
    TM = tm if B >= tm else _round_up(max(B, 8), 8)
    Bp = _round_up(B, TM)
    num_tiles = Bp // TM

    # zero-pad activations (fused with producers under jit); matmul operands
    # in bf16, eps stays f32.
    xp = jnp.zeros((Bp, P_IN), jnp.bfloat16).at[:B, :D_IN].set(
        x2d.astype(jnp.bfloat16))
    epsp = jnp.zeros((Bp, P_Z), jnp.float32).at[:B, :D_Z].set(
        eps.astype(jnp.float32))

    w1p, b1p, whp, bhp, w3p, b3p, w4p, b4p = packed_params
    args = (xp, w1p, b1p, whp, bhp, w3p, b3p, w4p, b4p, epsp)

    # Activations tiled over the batch grid; weights/biases use a constant
    # index_map so Pallas DMAs them once and keeps them VMEM-resident.
    # TODO(synk): pipeline_mode=pl.Buffered(1) on the weight specs would free
    # ~2 MiB of VMEM (matters only if TM is pushed to 1024 on v7x).
    in_specs = [
        pl.BlockSpec((TM, P_IN), lambda i: (i, 0)),        # x
        pl.BlockSpec((P_IN, P_H), lambda i: (0, 0)),       # W1
        pl.BlockSpec((1, P_H), lambda i: (0, 0)),          # b1
        pl.BlockSpec((P_H, 2 * P_Z), lambda i: (0, 0)),    # W_heads (fc21|fc22)
        pl.BlockSpec((1, 2 * P_Z), lambda i: (0, 0)),      # b_heads
        pl.BlockSpec((P_Z, P_H), lambda i: (0, 0)),        # W3
        pl.BlockSpec((1, P_H), lambda i: (0, 0)),          # b3
        pl.BlockSpec((P_H, P_IN), lambda i: (0, 0)),       # W4
        pl.BlockSpec((1, P_IN), lambda i: (0, 0)),         # b4
        pl.BlockSpec((TM, P_Z), lambda i: (i, 0)),         # eps
    ]
    out_specs = (
        pl.BlockSpec((TM, P_IN), lambda i: (i, 0)),        # recon (bf16)
        pl.BlockSpec((TM, 2 * P_Z), lambda i: (i, 0)),     # [mu | logvar] (f32)
    )

    flops = 2 * Bp * (P_IN * P_H + P_H * 2 * P_Z + P_Z * P_H + P_H * P_IN)
    transcendentals = Bp * (P_Z + P_IN)                    # exp + tanh
    weight_bytes = 2 * (P_IN * P_H + P_H * 2 * P_Z + P_Z * P_H + P_H * P_IN) \
        + 4 * (P_H + 2 * P_Z + P_H + P_IN)
    act_bytes = Bp * (2 * P_IN + 4 * P_Z        # x (bf16), eps (f32) in
                      + 2 * P_IN + 4 * 2 * P_Z)  # recon (bf16), heads (f32) out
    cost = pl.CostEstimate(flops=flops,
                           transcendentals=transcendentals,
                           bytes_accessed=weight_bytes + act_bytes)

    recon_p, heads_p = pl.pallas_call(
        _vae_kernel,
        grid=(num_tiles,),
        in_specs=in_specs,
        out_specs=out_specs,
        out_shape=(
            jax.ShapeDtypeStruct((Bp, P_IN), jnp.bfloat16),
            jax.ShapeDtypeStruct((Bp, 2 * P_Z), jnp.float32),
        ),
        compiler_params=pltpu.CompilerParams(
            dimension_semantics=_dim_semantics(num_tiles),
            vmem_limit_bytes=48 * 1024 * 1024,   # fits TM=512 on v7x's 64 MiB
        ),
        cost_estimate=cost,
    )(*args)

    # slice padding back off; recon cast back to f32 for interface parity
    recon = recon_p[:B, :D_IN].astype(jnp.float32)
    mu = heads_p[:B, :D_Z]
    logvar = heads_p[:B, P_Z:P_Z + D_Z]
    return recon, mu, logvar


def init_params(key):
    """Deterministic init matching nn.Linear fan-in rule, stored (in, out)."""
    def linear(key, fan_in, fan_out):
        kw, kb = jax.random.split(key)
        bound = 1.0 / jnp.sqrt(fan_in)
        w = jax.random.uniform(kw, (fan_in, fan_out), jnp.float32, -bound, bound)
        b = jax.random.uniform(kb, (fan_out,), jnp.float32, -bound, bound)
        return w, b

    keys = jax.random.split(key, 5)
    w1, b1 = linear(keys[0], 784, 400)    # fc1
    w21, b21 = linear(keys[1], 400, 40)   # fc21 (mu)
    w22, b22 = linear(keys[2], 400, 40)   # fc22 (logvar)
    w3, b3 = linear(keys[3], 40, 400)     # fc3
    w4, b4 = linear(keys[4], 400, 784)    # fc4
    return (w1, b1, w21, b21, w22, b22, w3, b3, w4, b4)


def _reference(x, params, eps):
    """Pure-JAX f32 reference (matches the PyTorch forward)."""
    (w1, b1, w21, b21, w22, b22, w3, b3, w4, b4) = params
    x2d = x.reshape(x.shape[0], D_IN)
    h1 = jax.nn.relu(x2d @ w1 + b1)
    mu = h1 @ w21 + b21
    logvar = h1 @ w22 + b22
    z = mu + eps * jnp.exp(0.5 * logvar)
    h3 = jax.nn.relu(z @ w3 + b3)
    recon = jax.nn.sigmoid(h3 @ w4 + b4)
    return recon, mu, logvar


if __name__ == "__main__":
    key = jax.random.PRNGKey(0)
    k_param, k_x, k_eps = jax.random.split(key, 3)

    B = 2
    x = jax.random.uniform(k_x, (B, 1, 28, 28), jnp.float32)   # MNIST-like input
    # TODO(synk): eps could be drawn in-kernel (pltpu.prng_seed + stateful_normal
    # with a scalar-prefetched seed) to drop an input stream; kept explicit here
    # so the forward is deterministic and testable against the reference.
    eps = jax.random.normal(k_eps, (B, D_Z), jnp.float32)
    params = init_params(k_param)

    # Pack/pad/cast weights ONCE (hoisted out of the per-call path).
    packed = pack_params(params)
    packed = jax.block_until_ready(packed)

    recon, mu, logvar = vae_forward(x, packed, eps)
    jax.block_until_ready((recon, mu, logvar))

    # sanity check vs. pure-JAX f32 reference (bf16 matmul operands and bf16
    # recon store => loosened tolerance)
    r_ref, mu_ref, lv_ref = _reference(x, params, eps)
    assert recon.shape == (B, D_IN) and mu.shape == (B, D_Z) and logvar.shape == (B, D_Z)
    assert jnp.allclose(recon, r_ref, atol=2e-2), "recon mismatch"
    assert jnp.allclose(mu, mu_ref, atol=2e-2), "mu mismatch"
    assert jnp.allclose(logvar, lv_ref, atol=2e-2), "logvar mismatch"

    print("KERNEL_OK")
</pallas_src>

<mosaic_0001>
module attributes {stable_mosaic.version = 11 : i64} {
  func.func @_vae_kernel(%arg0: i32, %arg1: memref<8x896xbf16, #tpu.memory_space<vmem>>, %arg2: memref<896x512xbf16, #tpu.memory_space<vmem>>, %arg3: memref<1x512xf32, #tpu.memory_space<vmem>>, %arg4: memref<512x256xbf16, #tpu.memory_space<vmem>>, %arg5: memref<1x256xf32, #tpu.memory_space<vmem>>, %arg6: memref<128x512xbf16, #tpu.memory_space<vmem>>, %arg7: memref<1x512xf32, #tpu.memory_space<vmem>>, %arg8: memref<512x896xbf16, #tpu.memory_space<vmem>>, %arg9: memref<1x896xf32, #tpu.memory_space<vmem>>, %arg10: memref<8x128xf32, #tpu.memory_space<vmem>>, %arg11: memref<8x896xbf16, #tpu.memory_space<vmem>>, %arg12: memref<8x256xf32, #tpu.memory_space<vmem>>) attributes {dimension_semantics = [#tpu.dimension_semantics<parallel>], iteration_bounds = array<i64: 1>, scalar_prefetch = 0 : i64, scratch_operands = 0 : i64, tpu.core_type = #tpu.core_type<tc>, window_params = [{transform_indices = @transform_0, window_bounds = array<i64: 8, 896>}, {pipeline_mode = #tpu.pipeline_mode<synchronous>, transform_indices = @transform_1, window_bounds = array<i64: 896, 512>}, {pipeline_mode = #tpu.pipeline_mode<synchronous>, transform_indices = @transform_2, window_bounds = array<i64: 1, 512>}, {pipeline_mode = #tpu.pipeline_mode<synchronous>, transform_indices = @transform_3, window_bounds = array<i64: 512, 256>}, {pipeline_mode = #tpu.pipeline_mode<synchronous>, transform_indices = @transform_4, window_bounds = array<i64: 1, 256>}, {pipeline_mode = #tpu.pipeline_mode<synchronous>, transform_indices = @transform_5, window_bounds = array<i64: 128, 512>}, {pipeline_mode = #tpu.pipeline_mode<synchronous>, transform_indices = @transform_6, window_bounds = array<i64: 1, 512>}, {pipeline_mode = #tpu.pipeline_mode<synchronous>, transform_indices = @transform_7, window_bounds = array<i64: 512, 896>}, {pipeline_mode = #tpu.pipeline_mode<synchronous>, transform_indices = @transform_8, window_bounds = array<i64: 1, 896>}, {transform_indices = @transform_9, window_bounds = array<i64: 8, 128>}, {transform_indices = @transform_10, window_bounds = array<i64: 8, 896>}, {transform_indices = @transform_11, window_bounds = array<i64: 8, 256>}]} {
    %c0 = arith.constant 0 : index
    %c0_0 = arith.constant 0 : index
    %0 = vector.load %arg1[%c0, %c0_0] : memref<8x896xbf16, #tpu.memory_space<vmem>>, vector<8x896xbf16>
    %c0_1 = arith.constant 0 : index
    %c0_2 = arith.constant 0 : index
    %1 = vector.load %arg2[%c0_1, %c0_2] : memref<896x512xbf16, #tpu.memory_space<vmem>>, vector<896x512xbf16>
    %cst = arith.constant dense<0.000000e+00> : vector<8x512xf32>
    %2 = tpu.matmul %0, %1, %cst {dimension_numbers = #tpu.dot_dimension_numbers<[1], [0], [0], [1], [0, 0, 1, 1], [], []>} : vector<8x896xbf16>, vector<896x512xbf16>, vector<8x512xf32> -> vector<8x512xf32>
    %c0_3 = arith.constant 0 : index
    %c0_4 = arith.constant 0 : index
    %3 = vector.load %arg3[%c0_3, %c0_4] : memref<1x512xf32, #tpu.memory_space<vmem>>, vector<1x512xf32>
    %4 = vector.broadcast %3 : vector<1x512xf32> to vector<8x512xf32>
    %5 = arith.addf %2, %4 : vector<8x512xf32>
    %cst_5 = arith.constant 0.000000e+00 : f32
    %6 = vector.broadcast %cst_5 : f32 to vector<8x512xf32>
    %7 = arith.maximumf %5, %6 : vector<8x512xf32>
    %8 = arith.truncf %7 : vector<8x512xf32> to vector<8x512xbf16>
    %c0_6 = arith.constant 0 : index
    %c0_7 = arith.constant 0 : index
    %9 = vector.load %arg4[%c0_6, %c0_7] : memref<512x256xbf16, #tpu.memory_space<vmem>>, vector<512x256xbf16>
    %cst_8 = arith.constant dense<0.000000e+00> : vector<8x256xf32>
    %10 = tpu.matmul %8, %9, %cst_8 {dimension_numbers = #tpu.dot_dimension_numbers<[1], [0], [0], [1], [0, 0, 1, 1], [], []>} : vector<8x512xbf16>, vector<512x256xbf16>, vector<8x256xf32> -> vector<8x256xf32>
    %c0_9 = arith.constant 0 : index
    %c0_10 = arith.constant 0 : index
    %11 = vector.load %arg5[%c0_9, %c0_10] : memref<1x256xf32, #tpu.memory_space<vmem>>, vector<1x256xf32>
    %12 = vector.broadcast %11 : vector<1x256xf32> to vector<8x256xf32>
    %13 = arith.addf %10, %12 : vector<8x256xf32>
    %14 = vector.extract_strided_slice %13 {offsets = [0, 0], sizes = [8, 128], strides = [1, 1]} : vector<8x256xf32> to vector<8x128xf32>
    %15 = vector.extract_strided_slice %13 {offsets = [0, 128], sizes = [8, 128], strides = [1, 1]} : vector<8x256xf32> to vector<8x128xf32>
    %c0_11 = arith.constant 0 : index
    %c0_12 = arith.constant 0 : index
    %16 = vector.load %arg10[%c0_11, %c0_12] : memref<8x128xf32, #tpu.memory_space<vmem>>, vector<8x128xf32>
    %cst_13 = arith.constant 5.000000e-01 : f32
    %17 = vector.broadcast %cst_13 : f32 to vector<8x128xf32>
    %18 = arith.mulf %17, %15 : vector<8x128xf32>
    %19 = math.exp %18 : vector<8x128xf32>
    %20 = arith.mulf %16, %19 : vector<8x128xf32>
    %21 = arith.addf %14, %20 : vector<8x128xf32>
    %22 = arith.truncf %21 : vector<8x128xf32> to vector<8x128xbf16>
    %c0_14 = arith.constant 0 : index
    %c0_15 = arith.constant 0 : index
    %23 = vector.load %arg6[%c0_14, %c0_15] : memref<128x512xbf16, #tpu.memory_space<vmem>>, vector<128x512xbf16>
    %cst_16 = arith.constant dense<0.000000e+00> : vector<8x512xf32>
    %24 = tpu.matmul %22, %23, %cst_16 {dimension_numbers = #tpu.dot_dimension_numbers<[1], [0], [0], [1], [0, 0, 1, 1], [], []>} : vector<8x128xbf16>, vector<128x512xbf16>, vector<8x512xf32> -> vector<8x512xf32>
    %c0_17 = arith.constant 0 : index
    %c0_18 = arith.constant 0 : index
    %25 = vector.load %arg7[%c0_17, %c0_18] : memref<1x512xf32, #tpu.memory_space<vmem>>, vector<1x512xf32>
    %26 = vector.broadcast %25 : vector<1x512xf32> to vector<8x512xf32>
    %27 = arith.addf %24, %26 : vector<8x512xf32>
    %cst_19 = arith.constant 0.000000e+00 : f32
    %28 = vector.broadcast %cst_19 : f32 to vector<8x512xf32>
    %29 = arith.maximumf %27, %28 : vector<8x512xf32>
    %30 = arith.truncf %29 : vector<8x512xf32> to vector<8x512xbf16>
    %c0_20 = arith.constant 0 : index
    %c0_21 = arith.constant 0 : index
    %31 = vector.load %arg8[%c0_20, %c0_21] : memref<512x896xbf16, #tpu.memory_space<vmem>>, vector<512x896xbf16>
    %cst_22 = arith.constant dense<0.000000e+00> : vector<8x896xf32>
    %32 = tpu.matmul %30, %31, %cst_22 {dimension_numbers = #tpu.dot_dimension_numbers<[1], [0], [0], [1], [0, 0, 1, 1], [], []>} : vector<8x512xbf16>, vector<512x896xbf16>, vector<8x896xf32> -> vector<8x896xf32>
    %c0_23 = arith.constant 0 : index
    %c0_24 = arith.constant 0 : index
    %33 = vector.load %arg9[%c0_23, %c0_24] : memref<1x896xf32, #tpu.memory_space<vmem>>, vector<1x896xf32>
    %34 = vector.broadcast %33 : vector<1x896xf32> to vector<8x896xf32>
    %35 = arith.addf %32, %34 : vector<8x896xf32>
    %cst_25 = arith.constant 5.000000e-01 : f32
    %36 = vector.broadcast %cst_25 : f32 to vector<8x896xf32>
    %37 = arith.mulf %36, %35 : vector<8x896xf32>
    %38 = math.tanh %37 : vector<8x896xf32>
    %cst_26 = arith.constant 5.000000e-01 : f32
    %39 = vector.broadcast %cst_26 : f32 to vector<8x896xf32>
    %40 = arith.mulf %39, %38 : vector<8x896xf32>
    %cst_27 = arith.constant 5.000000e-01 : f32
    %41 = vector.broadcast %cst_27 : f32 to vector<8x896xf32>
    %42 = arith.addf %40, %41 : vector<8x896xf32>
    %43 = arith.truncf %42 : vector<8x896xf32> to vector<8x896xbf16>
    %c0_28 = arith.constant 0 : index
    %c0_29 = arith.constant 0 : index
    %44 = vector.load %arg11[%c0_28, %c0_29] : memref<8x896xbf16, #tpu.memory_space<vmem>>, vector<8x896xbf16>
    tpu.vector_store %arg11[%c0_28, %c0_29], %43 {strides = array<i32>} : memref<8x896xbf16, #tpu.memory_space<vmem>>, vector<8x896xbf16>,
    %c0_30 = arith.constant 0 : index
    %c0_31 = arith.constant 0 : index
    %45 = vector.load %arg12[%c0_30, %c0_31] : memref<8x256xf32, #tpu.memory_space<vmem>>, vector<8x256xf32>
    tpu.vector_store %arg12[%c0_30, %c0_31], %13 {strides = array<i32>} : memref<8x256xf32, #tpu.memory_space<vmem>>, vector<8x256xf32>,
    return
  }
  func.func @transform_0(%arg0: i32) -> (i32, i32) {
    %c0_i32 = arith.constant 0 : i32
    %c0_i32_0 = arith.constant 0 : i32
    return %arg0, %c0_i32 : i32, i32
  }
  func.func @transform_1(%arg0: i32) -> (i32, i32) {
    %c0_i32 = arith.constant 0 : i32
    %c0_i32_0 = arith.constant 0 : i32
    %c0_i32_1 = arith.constant 0 : i32
    return %c0_i32, %c0_i32_0 : i32, i32
  }
  func.func @transform_2(%arg0: i32) -> (i32, i32) {
    %c0_i32 = arith.constant 0 : i32
    %c0_i32_0 = arith.constant 0 : i32
    %c0_i32_1 = arith.constant 0 : i32
    return %c0_i32, %c0_i32_0 : i32, i32
  }
  func.func @transform_3(%arg0: i32) -> (i32, i32) {
    %c0_i32 = arith.constant 0 : i32
    %c0_i32_0 = arith.constant 0 : i32
    %c0_i32_1 = arith.constant 0 : i32
    return %c0_i32, %c0_i32_0 : i32, i32
  }
  func.func @transform_4(%arg0: i32) -> (i32, i32) {
    %c0_i32 = arith.constant 0 : i32
    %c0_i32_0 = arith.constant 0 : i32
    %c0_i32_1 = arith.constant 0 : i32
    return %c0_i32, %c0_i32_0 : i32, i32
  }
  func.func @transform_5(%arg0: i32) -> (i32, i32) {
    %c0_i32 = arith.constant 0 : i32
    %c0_i32_0 = arith.constant 0 : i32
    %c0_i32_1 = arith.constant 0 : i32
    return %c0_i32, %c0_i32_0 : i32, i32
  }
  func.func @transform_6(%arg0: i32) -> (i32, i32) {
    %c0_i32 = arith.constant 0 : i32
    %c0_i32_0 = arith.constant 0 : i32
    %c0_i32_1 = arith.constant 0 : i32
    return %c0_i32, %c0_i32_0 : i32, i32
  }
  func.func @transform_7(%arg0: i32) -> (i32, i32) {
    %c0_i32 = arith.constant 0 : i32
    %c0_i32_0 = arith.constant 0 : i32
    %c0_i32_1 = arith.constant 0 : i32
    return %c0_i32, %c0_i32_0 : i32, i32
  }
  func.func @transform_8(%arg0: i32) -> (i32, i32) {
    %c0_i32 = arith.constant 0 : i32
    %c0_i32_0 = arith.constant 0 : i32
    %c0_i32_1 = arith.constant 0 : i32
    return %c0_i32, %c0_i32_0 : i32, i32
  }
  func.func @transform_9(%arg0: i32) -> (i32, i32) {
    %c0_i32 = arith.constant 0 : i32
    %c0_i32_0 = arith.constant 0 : i32
    return %arg0, %c0_i32 : i32, i32
  }
  func.func @transform_10(%arg0: i32) -> (i32, i32) {
    %c0_i32 = arith.constant 0 : i32
    %c0_i32_0 = arith.constant 0 : i32
    return %arg0, %c0_i32 : i32, i32
  }
  func.func @transform_11(%arg0: i32) -> (i32, i32) {
    %c0_i32 = arith.constant 0 : i32
    %c0_i32_0 = arith.constant 0 : i32
    return %arg0, %c0_i32 : i32, i32
  }
}

</mosaic_0001>

<bundles_post_ra>
// kernel: vae_forward.1
= control target key start
LH: loop header
LB: loop body
LE: loop exit
PB: predicated region body
PF: predicated region fallthrough
CT: control target
= control target key end

     0   :  { %17 = vsyncpa [#allocation3], 0  ;;  %s6310_s0 = inlined_call_operand.vmem [shape: bf16[8,896], index: 0, kind: input, shape index: {}]   ;;  %s6311_s1 = inlined_call_operand.hbm [shape: bf16[896,512], index: 1, kind: input, shape index: {}]   ;;  %s6312_s2 = inlined_call_operand.vmem [shape: f32[1,512], index: 2, kind: input, shape index: {}]   ;;  %s6313_s3 = inlined_call_operand.hbm [shape: bf16[512,256], index: 3, kind: input, shape index: {}]   ;;  %s6314_s4 = inlined_call_operand.vmem [shape: f32[1,256], index: 4, kind: input, shape index: {}]   ;;  %s6315_s5 = inlined_call_operand.hbm [shape: bf16[128,512], index: 5, kind: input, shape index: {}]   ;;  %s6316_s6 = inlined_call_operand.vmem [shape: f32[1,512], index: 6, kind: input, shape index: {}]   ;;  %s6317_s7 = inlined_call_operand.hbm [shape: bf16[512,896], index: 7, kind: input, shape index: {}]   ;;  %s6318_s8 = inlined_call_operand.vmem [shape: f32[1,896], index: 8, kind: input, shape index: {}]   ;;  %s6319_s9 = inlined_call_operand.vmem [shape: f32[8,128], index: 9, kind: input, shape index: {}]   ;;  %s6320_s10 = inlined_call_operand.vmem [shape: bf16[8,896], index: 10, kind: output, shape index: {0}]   ;;  %s6321_s11 = inlined_call_operand.vmem [shape: f32[8,256], index: 11, kind: output, shape index: {1}]  }
   0x1   :  { %18 = vsyncpa [#allocation5], 0 }
   0x2   :  { %19 = vsyncpa [#allocation8], 0  ;;  %s6041_s17 = smov [#allocation4]   ;;  %s5947_s21 = scalar_lea.hbm %s6313_s3, 8192 }
   0x3   :  { %s41_s18 = sshll.u32 %s6041_s17, 4  ;;  %p5948_p0 = scmp.ne.s32.totalorder %s6313_s3, %s5947_s21  ;;  %s42_s18 = int_to_ptr.vmem [resolvable:$true] %s41_s18 }
   0x4   :  { %p5951_p1 = scmp.lt.u32.totalorder %s5947_s21, %s6313_s3 }
   0x6   :  { %p5953_p2 = pnand %p5951_p1, %p5948_p0 }
   0x8   :  { %5956 = shalt.err (!%p5953_p2)
}
   0x9   :  { %s5957_s26 = scalar_lea.vmem %s42_s18, 8192  ;;  %p5962_p4 = scmp.lt.s32.totalorder %s42_s18, %s42_s18 }
   0xa   :  { %p5958_p3 = scmp.ne.s32.totalorder %s42_s18, %s5957_s26  ;;  %p5963_p5 = scmp.lt.s32.totalorder %s5957_s26, %s5957_s26 }
   0xc   :  { %p5964_p6 = por %p5963_p5, %p5962_p4 }
   0xe   :  { %p5965_p7 = pnand %p5964_p6, %p5958_p3 }
  0x10   :  { %5968 = shalt.err (!%p5965_p7)
}
  0x11   :  { %s6042_s27 = smov 128   ;;  %s6043_s28 = smov 8  }
  0x12   :  { %47 = dma.hbm_to_vmem [thread:$0]  %s6313_s3, 8192, %s42_s18, [#allocation5], %s6042_s27, %s6042_s27, %s6043_s28  }
  0x13   :  { %s6044_s12 = smov [#allocation2]   ;;  %s5969_s16 = scalar_lea.hbm %s6311_s1, 28672 }
  0x14   :  { %s27_s13 = sshll.u32 %s6044_s12, 4  ;;  %p5970_p8 = scmp.ne.s32.totalorder %s6311_s1, %s5969_s16  ;;  %s28_s13 = int_to_ptr.vmem [resolvable:$true] %s27_s13 }
  0x15   :  { %p5973_p9 = scmp.lt.u32.totalorder %s5969_s16, %s6311_s1 }
  0x17   :  { %p5975_p10 = pnand %p5973_p9, %p5970_p8 }
  0x19   :  { %5978 = shalt.err (!%p5975_p10)
}
  0x1a   :  { %s5979_s22 = scalar_lea.vmem %s28_s13, 28672  ;;  %p5984_p12 = scmp.lt.s32.totalorder %s28_s13, %s28_s13 }
  0x1b   :  { %p5980_p11 = scmp.ne.s32.totalorder %s28_s13, %s5979_s22  ;;  %p5985_p13 = scmp.lt.s32.totalorder %s5979_s22, %s5979_s22 }
  0x1d   :  { %p5986_p0 = por %p5985_p13, %p5984_p12 }
  0x1f   :  { %p5987_p1 = pnand %p5986_p0, %p5980_p11 }
  0x21   :  { %5990 = shalt.err (!%p5987_p1)
}
  0x22   :  { %s6045_s3 = smov 256   ;;  %s6046_s18 = smov 16  }
  0x23   :  { %33 = dma.hbm_to_vmem [thread:$0]  %s6311_s1, 28672, %s28_s13, [#allocation3], %s6045_s3, %s6045_s3, %s6046_s18  }
  0x24   :  { %s6047_s25 = smov [#allocation6]   ;;  %s6048_s27 = smov [#allocation7]  }
  0x25   :  { %s55_s26 = sshll.u32 %s6047_s25, 4  ;;  %s69_s28 = sshll.u32 %s6048_s27, 4  ;;  %s56_s26 = int_to_ptr.vmem [resolvable:$true] %s55_s26  ;;  %s6136_s28 = int_to_ptr.vmem [resolvable:$true] %s69_s28 }
  0x26   :  { %s5991_s12 = scalar_lea.hbm %s6315_s5, 4096 }
  0x27   :  { %p5992_p2 = scmp.ne.s32.totalorder %s6315_s5, %s5991_s12  ;;  %p5995_p3 = scmp.lt.u32.totalorder %s5991_s12, %s6315_s5 }
  0x29   :  { %p5997_p4 = pnand %p5995_p3, %p5992_p2 }
  0x2b   :  { %6000 = shalt.err (!%p5997_p4)
}
  0x2c   :  { %s6001_s1 = scalar_lea.vmem %s56_s26, 4096  ;;  %p6006_p6 = scmp.lt.s32.totalorder %s56_s26, %s56_s26 }
  0x2d   :  { %p6002_p5 = scmp.ne.s32.totalorder %s56_s26, %s6001_s1  ;;  %p6007_p7 = scmp.lt.s32.totalorder %s6001_s1, %s6001_s1 }
  0x2f   :  { %p6008_p8 = por %p6007_p7, %p6006_p6 }
  0x31   :  { %p6009_p9 = pnand %p6008_p8, %p6002_p5 }
  0x33   :  { %6012 = shalt.err (!%p6009_p9)
}
  0x34   :  { %61 = dma.hbm_to_vmem [thread:$0]  %s6315_s5, 4096, %s56_s26, [#allocation5], %s6045_s3, %s6045_s3, %s6046_s18  }
  0x35   :  { %s6013_s22 = scalar_lea.hbm %s6317_s7, 28672 }
  0x36   :  { %p6014_p10 = scmp.ne.s32.totalorder %s6317_s7, %s6013_s22  ;;  %p6017_p11 = scmp.lt.u32.totalorder %s6013_s22, %s6317_s7 }
  0x38   :  { %p6019_p12 = pnand %p6017_p11, %p6014_p10 }
  0x3a   :  { %6022 = shalt.err (!%p6019_p12)
}
  0x3b   :  { %s6023_s29 = scalar_lea.vmem %s6136_s28, 28672  ;;  %p6028_p0 = scmp.lt.s32.totalorder %s6136_s28, %s6136_s28 }
  0x3c   :  { %p6024_p13 = scmp.ne.s32.totalorder %s6136_s28, %s6023_s29  ;;  %p6029_p1 = scmp.lt.s32.totalorder %s6023_s29, %s6023_s29 }
  0x3e   :  { %p6030_p2 = por %p6029_p1, %p6028_p0 }
  0x40   :  { %p6031_p3 = pnand %p6030_p2, %p6024_p13 }
  0x42   :  { %6034 = shalt.err (!%p6031_p3)
}
  0x43   :  { %s6049_s5 = smov 448   ;;  %s6050_s3 = smov 28  }
  0x44   :  { %75 = dma.hbm_to_vmem [thread:$0]  %s6317_s7, 28672, %s6136_s28, [#allocation8], %s6049_s5, %s6049_s5, %s6050_s3  }
  0x45   :  { %6035 = dma.done.wait [#allocation3], 28672  }
  0x46   :  { %6036 = vsyncadd [#allocation3], 4294938624 }
  0x47   :  { %6037 = dma.done.wait [#allocation5], 12288  }
  0x48   :  { %6038 = vsyncadd [#allocation5], 4294955008 }
  0x49   :  { %6039 = dma.done.wait [#allocation8], 28672  }
  0x4a   :  { %6040 = vsyncadd [#allocation8], 4294938624  ;;  %v5124_v0 = vld [vmem:[#allocation2 + $0x4] ss:$16 sps:$4 sm:$0xff]   ;;  %v5126_v1 = vld [vmem:[#allocation2 + $0xc] ss:$16 sps:$4 sm:$0xff]  }
  0x4b   :  { %1488 = vmatprep.subr.bf16.mxu0 %v5124_v0  ;;  %v5128_v2 = vld [vmem:[#allocation2] ss:$16 sps:$4 sm:$0xff]   ;;  %v5129_v3 = vld [vmem:[#allocation2 + $0x8] ss:$16 sps:$4 sm:$0xff]   ;;  %1652 = vmatprep.subr.bf16.mxu1 %v5126_v1  ;;  %v5130_v4 = vld [vmem:[#allocation2 + $0x24] ss:$16 sps:$4 sm:$0xff]  }
  0x4c   :  { %1489 = vmatpush1.bf16.msra.mxu0 %v5128_v2  ;;  %1653 = vmatpush1.bf16.msra.mxu1 %v5129_v3  ;;  %v5132_v5 = vld [vmem:[#allocation2 + $0x2c] ss:$16 sps:$4 sm:$0xff]   ;;  %v5134_v6 = vld [vmem:[#allocation2 + $0x20] ss:$16 sps:$4 sm:$0xff]   ;;  %v5135_v7 = vld [vmem:[#allocation2 + $0x28] ss:$16 sps:$4 sm:$0xff]  }
  0x4d   :  { %1490 = vmatprep.subr.bf16.mxu0 %v5130_v4  ;;  %1654 = vmatprep.subr.bf16.mxu1 %v5132_v5  ;;  %v5136_v8 = vld [vmem:[#allocation2 + $0x44] ss:$16 sps:$4 sm:$0xff]   ;;  %v5138_v9 = vld [vmem:[#allocation2 + $0x4c] ss:$16 sps:$4 sm:$0xff]   ;;  %v5140_v10 = vld [vmem:[#allocation2 + $0x40] ss:$16 sps:$4 sm:$0xff]  }
  0x4e   :  { %v5141_v11 = vld [vmem:[#allocation2 + $0x48] ss:$16 sps:$4 sm:$0xff]   ;;  %v5142_v12 = vld [vmem:[#allocation2 + $0x64] ss:$16 sps:$4 sm:$0xff]   ;;  %v5144_v13 = vld [vmem:[#allocation2 + $0x6c] ss:$16 sps:$4 sm:$0xff]  }
  0x4f   :  { %v5146_v14 = vld [vmem:[#allocation2 + $0x60] ss:$16 sps:$4 sm:$0xff]   ;;  %v5147_v15 = vld [vmem:[#allocation2 + $0x68] ss:$16 sps:$4 sm:$0xff]   ;;  %v5148_v16 = vld [vmem:[#allocation2 + $0x84] ss:$16 sps:$4 sm:$0xff]  }
  0x50   :  { %1491 = vmatpush1.bf16.msra.mxu0 %v5134_v6  ;;  %1655 = vmatpush1.bf16.msra.mxu1 %v5135_v7  ;;  %v5150_v17 = vld [vmem:[#allocation2 + $0x8c] ss:$16 sps:$4 sm:$0xff]   ;;  %v5152_v18 = vld [vmem:[#allocation2 + $0x80] ss:$16 sps:$4 sm:$0xff]   ;;  %v5153_v19 = vld [vmem:[#allocation2 + $0x88] ss:$16 sps:$4 sm:$0xff]  }
  0x51   :  { %1492 = vmatprep.subr.bf16.mxu0 %v5136_v8  ;;  %1656 = vmatprep.subr.bf16.mxu1 %v5138_v9  ;;  %v5154_v20 = vld [vmem:[#allocation2 + $0xa4] ss:$16 sps:$4 sm:$0xff]   ;;  %v5156_v21 = vld [vmem:[#allocation2 + $0xac] ss:$16 sps:$4 sm:$0xff]   ;;  %v5158_v22 = vld [vmem:[#allocation2 + $0xa0] ss:$16 sps:$4 sm:$0xff]  }
  0x52   :  { %v5159_v23 = vld [vmem:[#allocation2 + $0xa8] ss:$16 sps:$4 sm:$0xff]   ;;  %v5160_v24 = vld [vmem:[#allocation2 + $0xc4] ss:$16 sps:$4 sm:$0xff]   ;;  %v5162_v25 = vld [vmem:[#allocation2 + $0xcc] ss:$16 sps:$4 sm:$0xff]  }
  0x53   :  { %v5164_v26 = vld [vmem:[#allocation2 + $0xc0] ss:$16 sps:$4 sm:$0xff]   ;;  %v5165_v27 = vld [vmem:[#allocation2 + $0xc8] ss:$16 sps:$4 sm:$0xff]   ;;  %v5166_v28 = vld [vmem:[#allocation2 + $0xe4] ss:$16 sps:$4 sm:$0xff]  }
  0x54   :  { %1493 = vmatpush1.bf16.msra.mxu0 %v5140_v10  ;;  %1657 = vmatpush1.bf16.msra.mxu1 %v5141_v11  ;;  %v5168_v29 = vld [vmem:[#allocation2 + $0xec] ss:$16 sps:$4 sm:$0xff]   ;;  %v5170_v30 = vld [vmem:[#allocation2 + $0xe0] ss:$16 sps:$4 sm:$0xff]   ;;  %v5171_v31 = vld [vmem:[#allocation2 + $0xe8] ss:$16 sps:$4 sm:$0xff]  }
  0x55   :  { %1494 = vmatprep.subr.bf16.mxu0 %v5142_v12  ;;  %1658 = vmatprep.subr.bf16.mxu1 %v5144_v13  ;;  %v5172_v32 = vld [vmem:[#allocation2 + $0x104] ss:$16 sps:$4 sm:$0xff]   ;;  %v5174_v33 = vld [vmem:[#allocation2 + $0x10c] ss:$16 sps:$4 sm:$0xff]   ;;  %v5176_v34 = vld [vmem:[#allocation2 + $0x100] ss:$16 sps:$4 sm:$0xff]  }
  0x56   :  { %v5177_v35 = vld [vmem:[#allocation2 + $0x108] ss:$16 sps:$4 sm:$0xff]   ;;  %v5178_v36 = vld [vmem:[#allocation2 + $0x124] ss:$16 sps:$4 sm:$0xff]   ;;  %v5180_v37 = vld [vmem:[#allocation2 + $0x12c] ss:$16 sps:$4 sm:$0xff]  }
  0x57   :  { %v5182_v38 = vld [vmem:[#allocation2 + $0x120] ss:$16 sps:$4 sm:$0xff]   ;;  %v5183_v39 = vld [vmem:[#allocation2 + $0x128] ss:$16 sps:$4 sm:$0xff]   ;;  %v5184_v40 = vld [vmem:[#allocation2 + $0x144] ss:$16 sps:$4 sm:$0xff]  }
  0x58   :  { %1495 = vmatpush1.bf16.msra.mxu0 %v5146_v14  ;;  %1659 = vmatpush1.bf16.msra.mxu1 %v5147_v15  ;;  %v5186_v41 = vld [vmem:[#allocation2 + $0x14c] ss:$16 sps:$4 sm:$0xff]   ;;  %v5188_v42 = vld [vmem:[#allocation2 + $0x140] ss:$16 sps:$4 sm:$0xff]   ;;  %v5189_v43 = vld [vmem:[#allocation2 + $0x148] ss:$16 sps:$4 sm:$0xff]  }
  0x59   :  { %1496 = vmatprep.subr.bf16.mxu0 %v5148_v16  ;;  %1660 = vmatprep.subr.bf16.mxu1 %v5150_v17  ;;  %v5190_v44 = vld [vmem:[#allocation2 + $0x164] ss:$16 sps:$4 sm:$0xff]   ;;  %v5192_v45 = vld [vmem:[#allocation2 + $0x16c] ss:$16 sps:$4 sm:$0xff]   ;;  %v5194_v47 = vld [vmem:[#allocation2 + $0x160] ss:$16 sps:$4 sm:$0xff]  }
  0x5a   :  { %v93_v46 = vld [vmem:[%s6310_s0] sm:$0xff]  ;;  %v5195_v49 = vld [vmem:[#allocation2 + $0x168] ss:$16 sps:$4 sm:$0xff]   ;;  %v5198_v51 = vld [vmem:[#allocation2 + $0x18c] ss:$16 sps:$4 sm:$0xff]  }
  0x5b   :  { %v4459_v48 = vcombine.high %v93_v46, %v93_v46  ;;  %v5196_v50 = vld [vmem:[#allocation2 + $0x184] ss:$16 sps:$4 sm:$0xff]   ;;  %v5200_v52 = vld [vmem:[#allocation2 + $0x180] ss:$16 sps:$4 sm:$0xff]   ;;  %v5201_v53 = vld [vmem:[#allocation2 + $0x188] ss:$16 sps:$4 sm:$0xff]   ;;  %v4458_v4 = vcombine.low %v93_v46, %v93_v46 }
  0x5c   :  { %1497 = vmatpush1.bf16.msra.mxu0 %v5152_v18  ;;  %1661 = vmatpush1.bf16.msra.mxu1 %v5153_v19  ;;  %v5202_v54 = vld [vmem:[#allocation2 + $0x1a4] ss:$16 sps:$4 sm:$0xff]   ;;  %v5204_v55 = vld [vmem:[#allocation2 + $0x1ac] ss:$16 sps:$4 sm:$0xff]   ;;  %v5206_v56 = vld [vmem:[#allocation2 + $0x1a0] ss:$16 sps:$4 sm:$0xff]  }
  0x5d   :  { %1498 = vmatprep.subr.bf16.mxu0 %v5154_v20  ;;  %1662 = vmatprep.subr.bf16.mxu1 %v5156_v21  ;;  %v5207_v57 = vld [vmem:[#allocation2 + $0x1a8] ss:$16 sps:$4 sm:$0xff]   ;;  %v5208_v58 = vld [vmem:[#allocation2 + $0x1c4] ss:$16 sps:$4 sm:$0xff]   ;;  %v5210_v59 = vld [vmem:[#allocation2 + $0x1cc] ss:$16 sps:$4 sm:$0xff]  }
  0x5e   :  { %1520 = vmatprep.mubr.bf16.mxu0 %v4459_v48  ;;  %1684 = vmatprep.mubr.bf16.mxu1 %v4459_v48  ;;  %v5212_v60 = vld [vmem:[#allocation2 + $0x1c0] ss:$16 sps:$4 sm:$0xff]   ;;  %v5213_v61 = vld [vmem:[#allocation2 + $0x1c8] ss:$16 sps:$4 sm:$0xff]   ;;  %v5214_v62 = vld [vmem:[#allocation2 + $0x1e4] ss:$16 sps:$4 sm:$0xff]  }
  0x5f   :  { %v5216_v63 = vld [vmem:[#allocation2 + $0x1ec] ss:$16 sps:$4 sm:$0xff]   ;;  %v5218_v0 = vld [vmem:[#allocation2 + $0x1e0] ss:$16 sps:$4 sm:$0xff]   ;;  %v5219_v1 = vld [vmem:[#allocation2 + $0x1e8] ss:$16 sps:$4 sm:$0xff]  }
  0x60   :  { %1499 = vmatpush1.bf16.msra.mxu0 %v5158_v22  ;;  %1663 = vmatpush1.bf16.msra.mxu1 %v5159_v23  ;;  %v5224_v2 = vld [vmem:[#allocation2 + $0x204] ss:$16 sps:$4 sm:$0xff]   ;;  %v5227_v3 = vld [vmem:[#allocation2 + $0x20c] ss:$16 sps:$4 sm:$0xff]   ;;  %v5222_v5 = vld [vmem:[#allocation2 + $0x200] ss:$16 sps:$4 sm:$0xff]  }
  0x61   :  { %1500 = vmatprep.subr.bf16.mxu0 %v5160_v24  ;;  %1664 = vmatprep.subr.bf16.mxu1 %v5162_v25  ;;  %v5225_v6 = vld [vmem:[#allocation2 + $0x208] ss:$16 sps:$4 sm:$0xff]   ;;  %v5230_v7 = vld [vmem:[#allocation2 + $0x224] ss:$16 sps:$4 sm:$0xff]   ;;  %v5233_v8 = vld [vmem:[#allocation2 + $0x22c] ss:$16 sps:$4 sm:$0xff]  }
  0x62   :  { %v5228_v9 = vld [vmem:[#allocation2 + $0x220] ss:$16 sps:$4 sm:$0xff]   ;;  %v5231_v10 = vld [vmem:[#allocation2 + $0x228] ss:$16 sps:$4 sm:$0xff]   ;;  %v5236_v11 = vld [vmem:[#allocation2 + $0x244] ss:$16 sps:$4 sm:$0xff]  }
  0x63   :  { %v5239_v12 = vld [vmem:[#allocation2 + $0x24c] ss:$16 sps:$4 sm:$0xff]   ;;  %v5234_v13 = vld [vmem:[#allocation2 + $0x240] ss:$16 sps:$4 sm:$0xff]   ;;  %v5237_v14 = vld [vmem:[#allocation2 + $0x248] ss:$16 sps:$4 sm:$0xff]  }
  0x64   :  { %1501 = vmatpush1.bf16.msra.mxu0 %v5164_v26  ;;  %1665 = vmatpush1.bf16.msra.mxu1 %v5165_v27  ;;  %v5242_v15 = vld [vmem:[#allocation2 + $0x264] ss:$16 sps:$4 sm:$0xff]   ;;  %v5245_v16 = vld [vmem:[#allocation2 + $0x26c] ss:$16 sps:$4 sm:$0xff]   ;;  %v5240_v17 = vld [vmem:[#allocation2 + $0x260] ss:$16 sps:$4 sm:$0xff]  }
  0x65   :  { %1502 = vmatprep.subr.bf16.mxu0 %v5166_v28  ;;  %1666 = vmatprep.subr.bf16.mxu1 %v5168_v29  ;;  %v5243_v18 = vld [vmem:[#allocation2 + $0x268] ss:$16 sps:$4 sm:$0xff]   ;;  %v5248_v19 = vld [vmem:[#allocation2 + $0x284] ss:$16 sps:$4 sm:$0xff]   ;;  %v5251_v20 = vld [vmem:[#allocation2 + $0x28c] ss:$16 sps:$4 sm:$0xff]  }
  0x66   :  { %v5246_v21 = vld [vmem:[#allocation2 + $0x280] ss:$16 sps:$4 sm:$0xff]   ;;  %v5249_v22 = vld [vmem:[#allocation2 + $0x288] ss:$16 sps:$4 sm:$0xff]   ;;  %v5254_v23 = vld [vmem:[#allocation2 + $0x2a4] ss:$16 sps:$4 sm:$0xff]  }
  0x67   :  { %v5257_v24 = vld [vmem:[#allocation2 + $0x2ac] ss:$16 sps:$4 sm:$0xff]   ;;  %v5252_v25 = vld [vmem:[#allocation2 + $0x2a0] ss:$16 sps:$4 sm:$0xff]   ;;  %v5255_v26 = vld [vmem:[#allocation2 + $0x2a8] ss:$16 sps:$4 sm:$0xff]  }
  0x68   :  { %1503 = vmatpush1.bf16.msra.mxu0 %v5170_v30  ;;  %1667 = vmatpush1.bf16.msra.mxu1 %v5171_v31  ;;  %v5260_v27 = vld [vmem:[#allocation2 + $0x2c4] ss:$16 sps:$4 sm:$0xff]   ;;  %v5263_v28 = vld [vmem:[#allocation2 + $0x2cc] ss:$16 sps:$4 sm:$0xff]   ;;  %v5258_v31 = vld [vmem:[#allocation2 + $0x2c0] ss:$16 sps:$4 sm:$0xff]  }
  0x69   :  { %1504 = vmatprep.subr.bf16.mxu0 %v5172_v32  ;;  %1668 = vmatprep.subr.bf16.mxu1 %v5174_v33  ;;  %v6173_v29 = vld [vmem:[%s6310_s0 + $0x8] sm:$0xff]  ;;  %v5266_v33 = vld [vmem:[#allocation2 + $0x2e4] ss:$16 sps:$4 sm:$0xff]  }
  0x6a   :  { %v4461_v30 = vcombine.high %v6173_v29, %v6173_v29  ;;  %v5261_v32 = vld [vmem:[#allocation2 + $0x2c8] ss:$16 sps:$4 sm:$0xff]   ;;  %v5287_v46 = vld [vmem:[#allocation2 + $0x34c] ss:$16 sps:$4 sm:$0xff]  }
  0x6b   :  { %v5285_v48 = vld [vmem:[#allocation2 + $0x348] ss:$16 sps:$4 sm:$0xff]  }
  0x6c   :  { %1505 = vmatpush1.bf16.msra.mxu0 %v5176_v34  ;;  %1669 = vmatpush1.bf16.msra.mxu1 %v5177_v35  ;;  %v5269_v34 = vld [vmem:[#allocation2 + $0x2ec] ss:$16 sps:$4 sm:$0xff]   ;;  %v5264_v35 = vld [vmem:[#allocation2 + $0x2e0] ss:$16 sps:$4 sm:$0xff]  }
  0x6d   :  { %1506 = vmatprep.subr.bf16.mxu0 %v5178_v36  ;;  %1670 = vmatprep.subr.bf16.mxu1 %v5180_v37  ;;  %v5267_v36 = vld [vmem:[#allocation2 + $0x2e8] ss:$16 sps:$4 sm:$0xff]   ;;  %v5272_v37 = vld [vmem:[#allocation2 + $0x304] ss:$16 sps:$4 sm:$0xff]  }
  0x70   :  { %1507 = vmatpush1.bf16.msra.mxu0 %v5182_v38  ;;  %1671 = vmatpush1.bf16.msra.mxu1 %v5183_v39  ;;  %v5275_v38 = vld [vmem:[#allocation2 + $0x30c] ss:$16 sps:$4 sm:$0xff]   ;;  %v5270_v39 = vld [vmem:[#allocation2 + $0x300] ss:$16 sps:$4 sm:$0xff]  }
  0x71   :  { %1508 = vmatprep.subr.bf16.mxu0 %v5184_v40  ;;  %1672 = vmatprep.subr.bf16.mxu1 %v5186_v41  ;;  %v5273_v40 = vld [vmem:[#allocation2 + $0x308] ss:$16 sps:$4 sm:$0xff]   ;;  %v5278_v41 = vld [vmem:[#allocation2 + $0x324] ss:$16 sps:$4 sm:$0xff]  }
  0x74   :  { %1509 = vmatpush1.bf16.msra.mxu0 %v5188_v42  ;;  %1673 = vmatpush1.bf16.msra.mxu1 %v5189_v43  ;;  %v5281_v42 = vld [vmem:[#allocation2 + $0x32c] ss:$16 sps:$4 sm:$0xff]   ;;  %v5276_v43 = vld [vmem:[#allocation2 + $0x320] ss:$16 sps:$4 sm:$0xff]  }
  0x75   :  { %1510 = vmatprep.subr.bf16.mxu0 %v5190_v44  ;;  %1674 = vmatprep.subr.bf16.mxu1 %v5192_v45  ;;  %v5279_v44 = vld [vmem:[#allocation2 + $0x328] ss:$16 sps:$4 sm:$0xff]   ;;  %v5284_v45 = vld [vmem:[#allocation2 + $0x344] ss:$16 sps:$4 sm:$0xff]  }
  0x78   :  { %1511 = vmatpush1.bf16.msra.mxu0 %v5194_v47  ;;  %1675 = vmatpush1.bf16.msra.mxu1 %v5195_v49  ;;  %v5282_v47 = vld [vmem:[#allocation2 + $0x340] ss:$16 sps:$4 sm:$0xff]   ;;  %v5290_v49 = vld [vmem:[#allocation2 + $0x364] ss:$16 sps:$4 sm:$0xff]  }
  0x79   :  { %1512 = vmatprep.subr.bf16.mxu0 %v5196_v50  ;;  %1676 = vmatprep.subr.bf16.mxu1 %v5198_v51  ;;  %v5293_v50 = vld [vmem:[#allocation2 + $0x36c] ss:$16 sps:$4 sm:$0xff]   ;;  %v5288_v51 = vld [vmem:[#allocation2 + $0x360] ss:$16 sps:$4 sm:$0xff]  }
  0x7c   :  { %1513 = vmatpush1.bf16.msra.mxu0 %v5200_v52  ;;  %1677 = vmatpush1.bf16.msra.mxu1 %v5201_v53  ;;  %v5291_v52 = vld [vmem:[#allocation2 + $0x368] ss:$16 sps:$4 sm:$0xff]   ;;  %v5296_v53 = vld [vmem:[#allocation2 + $0x384] ss:$16 sps:$4 sm:$0xff]  }
  0x7d   :  { %1514 = vmatprep.subr.bf16.mxu0 %v5202_v54  ;;  %1678 = vmatprep.subr.bf16.mxu1 %v5204_v55  ;;  %v5299_v54 = vld [vmem:[#allocation2 + $0x38c] ss:$16 sps:$4 sm:$0xff]   ;;  %v5294_v55 = vld [vmem:[#allocation2 + $0x380] ss:$16 sps:$4 sm:$0xff]  }
  0x80   :  { %1515 = vmatpush1.bf16.msra.mxu0 %v5206_v56  ;;  %1679 = vmatpush1.bf16.msra.mxu1 %v5207_v57  ;;  %v5297_v56 = vld [vmem:[#allocation2 + $0x388] ss:$16 sps:$4 sm:$0xff]   ;;  %v5302_v57 = vld [vmem:[#allocation2 + $0x3a4] ss:$16 sps:$4 sm:$0xff]  }
  0x81   :  { %1516 = vmatprep.subr.bf16.mxu0 %v5208_v58  ;;  %1680 = vmatprep.subr.bf16.mxu1 %v5210_v59  ;;  %v5305_v58 = vld [vmem:[#allocation2 + $0x3ac] ss:$16 sps:$4 sm:$0xff]   ;;  %v5300_v59 = vld [vmem:[#allocation2 + $0x3a0] ss:$16 sps:$4 sm:$0xff]  }
  0x84   :  { %1517 = vmatpush1.bf16.msra.mxu0 %v5212_v60  ;;  %1681 = vmatpush1.bf16.msra.mxu1 %v5213_v61  ;;  %v5303_v60 = vld [vmem:[#allocation2 + $0x3a8] ss:$16 sps:$4 sm:$0xff]   ;;  %v5308_v61 = vld [vmem:[#allocation2 + $0x3c4] ss:$16 sps:$4 sm:$0xff]  }
  0x85   :  { %1518 = vmatprep.subr.bf16.mxu0 %v5214_v62  ;;  %1682 = vmatprep.subr.bf16.mxu1 %v5216_v63  ;;  %v5311_v62 = vld [vmem:[#allocation2 + $0x3cc] ss:$16 sps:$4 sm:$0xff]   ;;  %v5306_v63 = vld [vmem:[#allocation2 + $0x3c0] ss:$16 sps:$4 sm:$0xff]  }
  0x88   :  { %1519 = vmatpush1.bf16.msra.mxu0 %v5218_v0  ;;  %1683 = vmatpush1.bf16.msra.mxu1 %v5219_v1  ;;  %v5309_v0 = vld [vmem:[#allocation2 + $0x3c8] ss:$16 sps:$4 sm:$0xff]   ;;  %v5314_v1 = vld [vmem:[#allocation2 + $0x3e4] ss:$16 sps:$4 sm:$0xff]  }
  0x89   :  { %1529 = vmatprep.subr.bf16.mxu0 %v5224_v2  ;;  %1693 = vmatprep.subr.bf16.mxu1 %v5227_v3  ;;  %v5317_v2 = vld [vmem:[#allocation2 + $0x3ec] ss:$16 sps:$4 sm:$0xff]   ;;  %v5312_v3 = vld [vmem:[#allocation2 + $0x3e0] ss:$16 sps:$4 sm:$0xff]  }
  0x8b   :  { %1521 = vmatmul.mubr.bf16.vlgmr.msra.gmra.mrb[0].mxu0 %v4458_v4  ;;  %1685 = vmatmul.mubr.bf16.vlgmr.msra.gmra.mrb[0].mxu1 %v4458_v4  ;;  %v5315_v4 = vld [vmem:[#allocation2 + $0x3e8] ss:$16 sps:$4 sm:$0xff]  }
  0x8c   :  { %1530 = vmatpush1.bf16.msra.mxu0 %v5222_v5  ;;  %1694 = vmatpush1.bf16.msra.mxu1 %v5225_v6  ;;  %v5322_v5 = vld [vmem:[#allocation2 + $0x404] ss:$16 sps:$4 sm:$0xff]   ;;  %v5325_v6 = vld [vmem:[#allocation2 + $0x40c] ss:$16 sps:$4 sm:$0xff]  }
  0x8d   :  { %1531 = vmatprep.subr.bf16.mxu0 %v5230_v7  ;;  %1695 = vmatprep.subr.bf16.mxu1 %v5233_v8  ;;  %v4460_v7 = vcombine.low %v6173_v29, %v6173_v29  ;;  %v5320_v8 = vld [vmem:[#allocation2 + $0x400] ss:$16 sps:$4 sm:$0xff]   ;;  %v5355_v29 = vld [vmem:[#allocation2 + $0x4ac] ss:$16 sps:$4 sm:$0xff]  }
  0x8e   :  { %1561 = vmatprep.mubr.bf16.mxu0 %v4461_v30  ;;  %1725 = vmatprep.mubr.bf16.mxu1 %v4461_v30  ;;  %v5350_v30 = vld [vmem:[#allocation2 + $0x4a0] ss:$16 sps:$4 sm:$0xff]  }
  0x90   :  { %1532 = vmatpush1.bf16.msra.mxu0 %v5228_v9  ;;  %1696 = vmatpush1.bf16.msra.mxu1 %v5231_v10  ;;  %v5323_v9 = vld [vmem:[#allocation2 + $0x408] ss:$16 sps:$4 sm:$0xff]   ;;  %v5328_v10 = vld [vmem:[#allocation2 + $0x424] ss:$16 sps:$4 sm:$0xff]  }
  0x91   :  { %1533 = vmatprep.subr.bf16.mxu0 %v5236_v11  ;;  %1697 = vmatprep.subr.bf16.mxu1 %v5239_v12  ;;  %v6182_v11 = vld [vmem:[%s6310_s0 + $0x10] sm:$0xff]  ;;  %v5331_v12 = vld [vmem:[#allocation2 + $0x42c] ss:$16 sps:$4 sm:$0xff]  }
  0x94   :  { %1534 = vmatpush1.bf16.msra.mxu0 %v5234_v13  ;;  %1698 = vmatpush1.bf16.msra.mxu1 %v5237_v14  ;;  %v4463_v13 = vcombine.high %v6182_v11, %v6182_v11  ;;  %v5326_v14 = vld [vmem:[#allocation2 + $0x420] ss:$16 sps:$4 sm:$0xff]  }
  0x95   :  { %1535 = vmatprep.subr.bf16.mxu0 %v5242_v15  ;;  %1699 = vmatprep.subr.bf16.mxu1 %v5245_v16  ;;  %v5329_v15 = vld [vmem:[#allocation2 + $0x428] ss:$16 sps:$4 sm:$0xff]   ;;  %v5334_v16 = vld [vmem:[#allocation2 + $0x444] ss:$16 sps:$4 sm:$0xff]  }
  0x98   :  { %1536 = vmatpush1.bf16.msra.mxu0 %v5240_v17  ;;  %1700 = vmatpush1.bf16.msra.mxu1 %v5243_v18  ;;  %v5337_v17 = vld [vmem:[#allocation2 + $0x44c] ss:$16 sps:$4 sm:$0xff]   ;;  %v5332_v18 = vld [vmem:[#allocation2 + $0x440] ss:$16 sps:$4 sm:$0xff]  }
  0x99   :  { %1537 = vmatprep.subr.bf16.mxu0 %v5248_v19  ;;  %1701 = vmatprep.subr.bf16.mxu1 %v5251_v20  ;;  %v5335_v19 = vld [vmem:[#allocation2 + $0x448] ss:$16 sps:$4 sm:$0xff]   ;;  %v5340_v20 = vld [vmem:[#allocation2 + $0x464] ss:$16 sps:$4 sm:$0xff]  }
  0x9c   :  { %1538 = vmatpush1.bf16.msra.mxu0 %v5246_v21  ;;  %1702 = vmatpush1.bf16.msra.mxu1 %v5249_v22  ;;  %v5343_v21 = vld [vmem:[#allocation2 + $0x46c] ss:$16 sps:$4 sm:$0xff]   ;;  %v5338_v22 = vld [vmem:[#allocation2 + $0x460] ss:$16 sps:$4 sm:$0xff]  }
  0x9d   :  { %1539 = vmatprep.subr.bf16.mxu0 %v5254_v23  ;;  %1703 = vmatprep.subr.bf16.mxu1 %v5257_v24  ;;  %v5341_v23 = vld [vmem:[#allocation2 + $0x468] ss:$16 sps:$4 sm:$0xff]   ;;  %v5346_v24 = vld [vmem:[#allocation2 + $0x484] ss:$16 sps:$4 sm:$0xff]  }
  0xa0   :  { %1540 = vmatpush1.bf16.msra.mxu0 %v5252_v25  ;;  %1704 = vmatpush1.bf16.msra.mxu1 %v5255_v26  ;;  %v5349_v25 = vld [vmem:[#allocation2 + $0x48c] ss:$16 sps:$4 sm:$0xff]   ;;  %v5344_v26 = vld [vmem:[#allocation2 + $0x480] ss:$16 sps:$4 sm:$0xff]  }
  0xa1   :  { %1541 = vmatprep.subr.bf16.mxu0 %v5260_v27  ;;  %1705 = vmatprep.subr.bf16.mxu1 %v5263_v28  ;;  %v5347_v27 = vld [vmem:[#allocation2 + $0x488] ss:$16 sps:$4 sm:$0xff]   ;;  %v5352_v28 = vld [vmem:[#allocation2 + $0x4a4] ss:$16 sps:$4 sm:$0xff]  }
  0xa4   :  { %1542 = vmatpush1.bf16.msra.mxu0 %v5258_v31  ;;  %1706 = vmatpush1.bf16.msra.mxu1 %v5261_v32  ;;  %v5353_v31 = vld [vmem:[#allocation2 + $0x4a8] ss:$16 sps:$4 sm:$0xff]   ;;  %v5358_v32 = vld [vmem:[#allocation2 + $0x4c4] ss:$16 sps:$4 sm:$0xff]  }
  0xa5   :  { %1543 = vmatprep.subr.bf16.mxu0 %v5266_v33  ;;  %1707 = vmatprep.subr.bf16.mxu1 %v5269_v34  ;;  %v5361_v33 = vld [vmem:[#allocation2 + $0x4cc] ss:$16 sps:$4 sm:$0xff]   ;;  %v5356_v34 = vld [vmem:[#allocation2 + $0x4c0] ss:$16 sps:$4 sm:$0xff]  }
  0xa8   :  { %1544 = vmatpush1.bf16.msra.mxu0 %v5264_v35  ;;  %1708 = vmatpush1.bf16.msra.mxu1 %v5267_v36  ;;  %v5359_v35 = vld [vmem:[#allocation2 + $0x4c8] ss:$16 sps:$4 sm:$0xff]   ;;  %v5364_v36 = vld [vmem:[#allocation2 + $0x4e4] ss:$16 sps:$4 sm:$0xff]  }
  0xa9   :  { %1545 = vmatprep.subr.bf16.mxu0 %v5272_v37  ;;  %1709 = vmatprep.subr.bf16.mxu1 %v5275_v38  ;;  %v5367_v37 = vld [vmem:[#allocation2 + $0x4ec] ss:$16 sps:$4 sm:$0xff]   ;;  %v5362_v38 = vld [vmem:[#allocation2 + $0x4e0] ss:$16 sps:$4 sm:$0xff]  }
  0xac   :  { %1546 = vmatpush1.bf16.msra.mxu0 %v5270_v39  ;;  %1710 = vmatpush1.bf16.msra.mxu1 %v5273_v40  ;;  %v5365_v39 = vld [vmem:[#allocation2 + $0x4e8] ss:$16 sps:$4 sm:$0xff]   ;;  %v5370_v40 = vld [vmem:[#allocation2 + $0x504] ss:$16 sps:$4 sm:$0xff]  }
  0xad   :  { %1547 = vmatprep.subr.bf16.mxu0 %v5278_v41  ;;  %1711 = vmatprep.subr.bf16.mxu1 %v5281_v42  ;;  %v5373_v41 = vld [vmem:[#allocation2 + $0x50c] ss:$16 sps:$4 sm:$0xff]   ;;  %v5368_v42 = vld [vmem:[#allocation2 + $0x500] ss:$16 sps:$4 sm:$0xff]  }
  0xb0   :  { %1548 = vmatpush1.bf16.msra.mxu0 %v5276_v43  ;;  %1712 = vmatpush1.bf16.msra.mxu1 %v5279_v44  ;;  %v5371_v43 = vld [vmem:[#allocation2 + $0x508] ss:$16 sps:$4 sm:$0xff]   ;;  %v5376_v44 = vld [vmem:[#allocation2 + $0x524] ss:$16 sps:$4 sm:$0xff]  }
  0xb1   :  { %1549 = vmatprep.subr.bf16.mxu0 %v5284_v45  ;;  %1713 = vmatprep.subr.bf16.mxu1 %v5287_v46  ;;  %v5379_v45 = vld [vmem:[#allocation2 + $0x52c] ss:$16 sps:$4 sm:$0xff]   ;;  %v5374_v46 = vld [vmem:[#allocation2 + $0x520] ss:$16 sps:$4 sm:$0xff]  }
  0xb4   :  { %1550 = vmatpush1.bf16.msra.mxu0 %v5282_v47  ;;  %1714 = vmatpush1.bf16.msra.mxu1 %v5285_v48  ;;  %v5377_v47 = vld [vmem:[#allocation2 + $0x528] ss:$16 sps:$4 sm:$0xff]   ;;  %v5382_v48 = vld [vmem:[#allocation2 + $0x544] ss:$16 sps:$4 sm:$0xff]  }
  0xb5   :  { %1551 = vmatprep.subr.bf16.mxu0 %v5290_v49  ;;  %1715 = vmatprep.subr.bf16.mxu1 %v5293_v50  ;;  %v5385_v49 = vld [vmem:[#allocation2 + $0x54c] ss:$16 sps:$4 sm:$0xff]   ;;  %v5380_v50 = vld [vmem:[#allocation2 + $0x540] ss:$16 sps:$4 sm:$0xff]  }
  0xb8   :  { %1552 = vmatpush1.bf16.msra.mxu0 %v5288_v51  ;;  %1716 = vmatpush1.bf16.msra.mxu1 %v5291_v52  ;;  %v5383_v51 = vld [vmem:[#allocation2 + $0x548] ss:$16 sps:$4 sm:$0xff]   ;;  %v5388_v52 = vld [vmem:[#allocation2 + $0x564] ss:$16 sps:$4 sm:$0xff]  }
  0xb9   :  { %1553 = vmatprep.subr.bf16.mxu0 %v5296_v53  ;;  %1717 = vmatprep.subr.bf16.mxu1 %v5299_v54  ;;  %v5391_v53 = vld [vmem:[#allocation2 + $0x56c] ss:$16 sps:$4 sm:$0xff]   ;;  %v5386_v54 = vld [vmem:[#allocation2 + $0x560] ss:$16 sps:$4 sm:$0xff]  }
  0xbc   :  { %1554 = vmatpush1.bf16.msra.mxu0 %v5294_v55  ;;  %1718 = vmatpush1.bf16.msra.mxu1 %v5297_v56  ;;  %v5389_v55 = vld [vmem:[#allocation2 + $0x568] ss:$16 sps:$4 sm:$0xff]   ;;  %v5394_v56 = vld [vmem:[#allocation2 + $0x584] ss:$16 sps:$4 sm:$0xff]  }
  0xbd   :  { %1555 = vmatprep.subr.bf16.mxu0 %v5302_v57  ;;  %1719 = vmatprep.subr.bf16.mxu1 %v5305_v58  ;;  %v5397_v57 = vld [vmem:[#allocation2 + $0x58c] ss:$16 sps:$4 sm:$0xff]   ;;  %v5392_v58 = vld [vmem:[#allocation2 + $0x580] ss:$16 sps:$4 sm:$0xff]  }
  0xc0   :  { %1556 = vmatpush1.bf16.msra.mxu0 %v5300_v59  ;;  %1720 = vmatpush1.bf16.msra.mxu1 %v5303_v60  ;;  %v5395_v59 = vld [vmem:[#allocation2 + $0x588] ss:$16 sps:$4 sm:$0xff]   ;;  %v5400_v60 = vld [vmem:[#allocation2 + $0x5a4] ss:$16 sps:$4 sm:$0xff]  }
  0xc1   :  { %1557 = vmatprep.subr.bf16.mxu0 %v5308_v61  ;;  %1721 = vmatprep.subr.bf16.mxu1 %v5311_v62  ;;  %v5403_v61 = vld [vmem:[#allocation2 + $0x5ac] ss:$16 sps:$4 sm:$0xff]   ;;  %v5398_v62 = vld [vmem:[#allocation2 + $0x5a0] ss:$16 sps:$4 sm:$0xff]  }
  0xc4   :  { %1558 = vmatpush1.bf16.msra.mxu0 %v5306_v63  ;;  %1722 = vmatpush1.bf16.msra.mxu1 %v5309_v0  ;;  %v5401_v63 = vld [vmem:[#allocation2 + $0x5a8] ss:$16 sps:$4 sm:$0xff]   ;;  %v5406_v0 = vld [vmem:[#allocation2 + $0x5c4] ss:$16 sps:$4 sm:$0xff]  }
  0xc5   :  { %1559 = vmatprep.subr.bf16.mxu0 %v5314_v1  ;;  %1723 = vmatprep.subr.bf16.mxu1 %v5317_v2  ;;  %v5409_v1 = vld [vmem:[#allocation2 + $0x5cc] ss:$16 sps:$4 sm:$0xff]   ;;  %v5404_v2 = vld [vmem:[#allocation2 + $0x5c0] ss:$16 sps:$4 sm:$0xff]  }
  0xc8   :  { %1560 = vmatpush1.bf16.msra.mxu0 %v5312_v3  ;;  %1724 = vmatpush1.bf16.msra.mxu1 %v5315_v4  ;;  %v5407_v3 = vld [vmem:[#allocation2 + $0x5c8] ss:$16 sps:$4 sm:$0xff]   ;;  %v5412_v4 = vld [vmem:[#allocation2 + $0x5e4] ss:$16 sps:$4 sm:$0xff]  }
  0xc9   :  { %1570 = vmatprep.subr.bf16.mxu0 %v5322_v5  ;;  %1734 = vmatprep.subr.bf16.mxu1 %v5325_v6  ;;  %v5415_v5 = vld [vmem:[#allocation2 + $0x5ec] ss:$16 sps:$4 sm:$0xff]   ;;  %v5410_v6 = vld [vmem:[#allocation2 + $0x5e0] ss:$16 sps:$4 sm:$0xff]  }
  0xcb   :  { %1562 = vmatmul.mubr.bf16.vlgmr.msra.gmra.mrb[0].mxu0 %v4460_v7  ;;  %1726 = vmatmul.mubr.bf16.vlgmr.msra.gmra.mrb[0].mxu1 %v4460_v7  ;;  %v5413_v7 = vld [vmem:[#allocation2 + $0x5e8] ss:$16 sps:$4 sm:$0xff]  }
  0xcc   :  { %1571 = vmatpush1.bf16.msra.mxu0 %v5320_v8  ;;  %1735 = vmatpush1.bf16.msra.mxu1 %v5323_v9  ;;  %v5420_v8 = vld [vmem:[#allocation2 + $0x604] ss:$16 sps:$4 sm:$0xff]   ;;  %v5423_v9 = vld [vmem:[#allocation2 + $0x60c] ss:$16 sps:$4 sm:$0xff]  }
  0xcd   :  { %1572 = vmatprep.subr.bf16.mxu0 %v5328_v10  ;;  %1736 = vmatprep.subr.bf16.mxu1 %v5331_v12  ;;  %v5418_v10 = vld [vmem:[#allocation2 + $0x600] ss:$16 sps:$4 sm:$0xff]   ;;  %v5421_v12 = vld [vmem:[#allocation2 + $0x608] ss:$16 sps:$4 sm:$0xff]  }
  0xce   :  { %1602 = vmatprep.mubr.bf16.mxu0 %v4463_v13  ;;  %1766 = vmatprep.mubr.bf16.mxu1 %v4463_v13  ;;  %v4462_v13 = vcombine.low %v6182_v11, %v6182_v11  ;;  %v5438_v11 = vld [vmem:[#allocation2 + $0x664] ss:$16 sps:$4 sm:$0xff]  }
  0xd0   :  { %1573 = vmatpush1.bf16.msra.mxu0 %v5326_v14  ;;  %1737 = vmatpush1.bf16.msra.mxu1 %v5329_v15  ;;  %v5426_v14 = vld [vmem:[#allocation2 + $0x624] ss:$16 sps:$4 sm:$0xff]   ;;  %v5429_v15 = vld [vmem:[#allocation2 + $0x62c] ss:$16 sps:$4 sm:$0xff]  }
  0xd1   :  { %1574 = vmatprep.subr.bf16.mxu0 %v5334_v16  ;;  %1738 = vmatprep.subr.bf16.mxu1 %v5337_v17  ;;  %v5424_v16 = vld [vmem:[#allocation2 + $0x620] ss:$16 sps:$4 sm:$0xff]   ;;  %v5427_v17 = vld [vmem:[#allocation2 + $0x628] ss:$16 sps:$4 sm:$0xff]  }
  0xd4   :  { %1575 = vmatpush1.bf16.msra.mxu0 %v5332_v18  ;;  %1739 = vmatpush1.bf16.msra.mxu1 %v5335_v19  ;;  %v5432_v18 = vld [vmem:[#allocation2 + $0x644] ss:$16 sps:$4 sm:$0xff]   ;;  %v5435_v19 = vld [vmem:[#allocation2 + $0x64c] ss:$16 sps:$4 sm:$0xff]  }
  0xd5   :  { %1576 = vmatprep.subr.bf16.mxu0 %v5340_v20  ;;  %1740 = vmatprep.subr.bf16.mxu1 %v5343_v21  ;;  %v5430_v20 = vld [vmem:[#allocation2 + $0x640] ss:$16 sps:$4 sm:$0xff]   ;;  %v5433_v21 = vld [vmem:[#allocation2 + $0x648] ss:$16 sps:$4 sm:$0xff]  }
  0xd8   :  { %1577 = vmatpush1.bf16.msra.mxu0 %v5338_v22  ;;  %1741 = vmatpush1.bf16.msra.mxu1 %v5341_v23  ;;  %v6051_v22 = vmov 0   ;;  %v5441_v23 = vld [vmem:[#allocation2 + $0x66c] ss:$16 sps:$4 sm:$0xff]  }
  0xd9   :  { %1578 = vmatprep.subr.bf16.mxu0 %v5346_v24  ;;  %1742 = vmatprep.subr.bf16.mxu1 %v5349_v25  ;;  %v5436_v24 = vld [vmem:[#allocation2 + $0x660] ss:$16 sps:$4 sm:$0xff]   ;;  %v5439_v25 = vld [vmem:[#allocation2 + $0x668] ss:$16 sps:$4 sm:$0xff]  }
  0xdc   :  { %1579 = vmatpush1.bf16.msra.mxu0 %v5344_v26  ;;  %1743 = vmatpush1.bf16.msra.mxu1 %v5347_v27  ;;  %v5444_v26 = vld [vmem:[#allocation2 + $0x684] ss:$16 sps:$4 sm:$0xff]   ;;  %v5447_v27 = vld [vmem:[#allocation2 + $0x68c] ss:$16 sps:$4 sm:$0xff]  }
  0xdd   :  { %1580 = vmatprep.subr.bf16.mxu0 %v5352_v28  ;;  %1744 = vmatprep.subr.bf16.mxu1 %v5355_v29  ;;  %v5442_v28 = vld [vmem:[#allocation2 + $0x680] ss:$16 sps:$4 sm:$0xff]   ;;  %v5445_v29 = vld [vmem:[#allocation2 + $0x688] ss:$16 sps:$4 sm:$0xff]  }
  0xe0   :  { %1581 = vmatpush1.bf16.msra.mxu0 %v5350_v30  ;;  %1745 = vmatpush1.bf16.msra.mxu1 %v5353_v31  ;;  %v5450_v30 = vld [vmem:[#allocation2 + $0x6a4] ss:$16 sps:$4 sm:$0xff]   ;;  %v5453_v31 = vld [vmem:[#allocation2 + $0x6ac] ss:$16 sps:$4 sm:$0xff]  }
  0xe1   :  { %1582 = vmatprep.subr.bf16.mxu0 %v5358_v32  ;;  %1746 = vmatprep.subr.bf16.mxu1 %v5361_v33  ;;  %v5448_v32 = vld [vmem:[#allocation2 + $0x6a0] ss:$16 sps:$4 sm:$0xff]   ;;  %v5451_v33 = vld [vmem:[#allocation2 + $0x6a8] ss:$16 sps:$4 sm:$0xff]  }
  0xe4   :  { %1583 = vmatpush1.bf16.msra.mxu0 %v5356_v34  ;;  %1747 = vmatpush1.bf16.msra.mxu1 %v5359_v35  ;;  %v5456_v34 = vld [vmem:[#allocation2 + $0x6c4] ss:$16 sps:$4 sm:$0xff]   ;;  %v5459_v35 = vld [vmem:[#allocation2 + $0x6cc] ss:$16 sps:$4 sm:$0xff]  }
  0xe5   :  { %1584 = vmatprep.subr.bf16.mxu0 %v5364_v36  ;;  %1748 = vmatprep.subr.bf16.mxu1 %v5367_v37  ;;  %v5454_v36 = vld [vmem:[#allocation2 + $0x6c0] ss:$16 sps:$4 sm:$0xff]   ;;  %v5457_v37 = vld [vmem:[#allocation2 + $0x6c8] ss:$16 sps:$4 sm:$0xff]  }
  0xe8   :  { %1585 = vmatpush1.bf16.msra.mxu0 %v5362_v38  ;;  %1749 = vmatpush1.bf16.msra.mxu1 %v5365_v39  ;;  %v5462_v38 = vld [vmem:[#allocation2 + $0x6e4] ss:$16 sps:$4 sm:$0xff]   ;;  %v5465_v39 = vld [vmem:[#allocation2 + $0x6ec] ss:$16 sps:$4 sm:$0xff]  }
  0xe9   :  { %1586 = vmatprep.subr.bf16.mxu0 %v5370_v40  ;;  %1750 = vmatprep.subr.bf16.mxu1 %v5373_v41  ;;  %v5460_v40 = vld [vmem:[#allocation2 + $0x6e0] ss:$16 sps:$4 sm:$0xff]   ;;  %v5463_v41 = vld [vmem:[#allocation2 + $0x6e8] ss:$16 sps:$4 sm:$0xff]  }
  0xec   :  { %1587 = vmatpush1.bf16.msra.mxu0 %v5368_v42  ;;  %1751 = vmatpush1.bf16.msra.mxu1 %v5371_v43  ;;  %v5469_v42 = vld [vmem:[#allocation4 + $0x4] ss:$8 sps:$4 sm:$0xff]   ;;  %v5466_v43 = vld [vmem:[%s6310_s0 + $0x18] ss:$0 sps:$4 sm:$0xff]  }
  0xed   :  { %1588 = vmatprep.subr.bf16.mxu0 %v5376_v44  ;;  %1752 = vmatprep.subr.bf16.mxu1 %v5379_v45  ;;  %v5467_v44 = vld [vmem:[#allocation4] ss:$8 sps:$4 sm:$0xff]   ;;  %v5472_v45 = vld [vmem:[#allocation4 + $0x14] ss:$8 sps:$4 sm:$0xff]  }
  0xf0   :  { %1589 = vmatpush1.bf16.msra.mxu0 %v5374_v46  ;;  %1753 = vmatpush1.bf16.msra.mxu1 %v5377_v47  ;;  %v5470_v46 = vld [vmem:[#allocation4 + $0x10] ss:$8 sps:$4 sm:$0xff]   ;;  %v5475_v47 = vld [vmem:[#allocation4 + $0x24] ss:$8 sps:$4 sm:$0xff]  }
  0xf1   :  { %1590 = vmatprep.subr.bf16.mxu0 %v5382_v48  ;;  %1754 = vmatprep.subr.bf16.mxu1 %v5385_v49  ;;  %v5473_v48 = vld [vmem:[#allocation4 + $0x20] ss:$8 sps:$4 sm:$0xff]   ;;  %v5478_v49 = vld [vmem:[#allocation4 + $0x34] ss:$8 sps:$4 sm:$0xff]  }
  0xf4   :  { %1591 = vmatpush1.bf16.msra.mxu0 %v5380_v50  ;;  %1755 = vmatpush1.bf16.msra.mxu1 %v5383_v51  ;;  %v5476_v50 = vld [vmem:[#allocation4 + $0x30] ss:$8 sps:$4 sm:$0xff]   ;;  %v5481_v51 = vld [vmem:[#allocation4 + $0x44] ss:$8 sps:$4 sm:$0xff]  }
  0xf5   :  { %1592 = vmatprep.subr.bf16.mxu0 %v5388_v52  ;;  %1756 = vmatprep.subr.bf16.mxu1 %v5391_v53  ;;  %v5479_v52 = vld [vmem:[#allocation4 + $0x40] ss:$8 sps:$4 sm:$0xff]   ;;  %v5484_v53 = vld [vmem:[#allocation4 + $0x54] ss:$8 sps:$4 sm:$0xff]  }
  0xf8   :  { %1593 = vmatpush1.bf16.msra.mxu0 %v5386_v54  ;;  %1757 = vmatpush1.bf16.msra.mxu1 %v5389_v55  ;;  %v5482_v54 = vld [vmem:[#allocation4 + $0x50] ss:$8 sps:$4 sm:$0xff]   ;;  %v5487_v55 = vld [vmem:[#allocation4 + $0x64] ss:$8 sps:$4 sm:$0xff]  }
  0xf9   :  { %1594 = vmatprep.subr.bf16.mxu0 %v5394_v56  ;;  %1758 = vmatprep.subr.bf16.mxu1 %v5397_v57  ;;  %v5485_v56 = vld [vmem:[#allocation4 + $0x60] ss:$8 sps:$4 sm:$0xff]   ;;  %v5490_v57 = vld [vmem:[#allocation4 + $0x74] ss:$8 sps:$4 sm:$0xff]  }
  0xfc   :  { %1595 = vmatpush1.bf16.msra.mxu0 %v5392_v58  ;;  %1759 = vmatpush1.bf16.msra.mxu1 %v5395_v59  ;;  %v5488_v58 = vld [vmem:[#allocation4 + $0x70] ss:$8 sps:$4 sm:$0xff]   ;;  %v5493_v59 = vld [vmem:[#allocation4 + $0x84] ss:$8 sps:$4 sm:$0xff]  }
  0xfd   :  { %1596 = vmatprep.subr.bf16.mxu0 %v5400_v60  ;;  %1760 = vmatprep.subr.bf16.mxu1 %v5403_v61  ;;  %v5491_v60 = vld [vmem:[#allocation4 + $0x80] ss:$8 sps:$4 sm:$0xff]   ;;  %v5496_v61 = vld [vmem:[#allocation4 + $0x94] ss:$8 sps:$4 sm:$0xff]  }
 0x100   :  { %1597 = vmatpush1.bf16.msra.mxu0 %v5398_v62  ;;  %1761 = vmatpush1.bf16.msra.mxu1 %v5401_v63  ;;  %v5494_v62 = vld [vmem:[#allocation4 + $0x90] ss:$8 sps:$4 sm:$0xff]   ;;  %v5499_v63 = vld [vmem:[#allocation4 + $0xa4] ss:$8 sps:$4 sm:$0xff]  }
 0x101   :  { %1598 = vmatprep.subr.bf16.mxu0 %v5406_v0  ;;  %1762 = vmatprep.subr.bf16.mxu1 %v5409_v1  ;;  %v5497_v0 = vld [vmem:[#allocation4 + $0xa0] ss:$8 sps:$4 sm:$0xff]   ;;  %v5502_v1 = vld [vmem:[#allocation4 + $0xb4] ss:$8 sps:$4 sm:$0xff]  }
 0x104   :  { %1599 = vmatpush1.bf16.msra.mxu0 %v5404_v2  ;;  %1763 = vmatpush1.bf16.msra.mxu1 %v5407_v3  ;;  %v5500_v2 = vld [vmem:[#allocation4 + $0xb0] ss:$8 sps:$4 sm:$0xff]   ;;  %v5505_v3 = vld [vmem:[#allocation4 + $0xc4] ss:$8 sps:$4 sm:$0xff]  }
 0x105   :  { %1600 = vmatprep.subr.bf16.mxu0 %v5412_v4  ;;  %1764 = vmatprep.subr.bf16.mxu1 %v5415_v5  ;;  %v5503_v4 = vld [vmem:[#allocation4 + $0xc0] ss:$8 sps:$4 sm:$0xff]   ;;  %v5508_v5 = vld [vmem:[#allocation4 + $0xd4] ss:$8 sps:$4 sm:$0xff]  }
 0x108   :  { %1601 = vmatpush1.bf16.msra.mxu0 %v5410_v6  ;;  %1765 = vmatpush1.bf16.msra.mxu1 %v5413_v7  ;;  %v5506_v6 = vld [vmem:[#allocation4 + $0xd0] ss:$8 sps:$4 sm:$0xff]   ;;  %v5511_v7 = vld [vmem:[#allocation4 + $0xe4] ss:$8 sps:$4 sm:$0xff]  }
 0x109   :  { %1611 = vmatprep.subr.bf16.mxu0 %v5420_v8  ;;  %1775 = vmatprep.subr.bf16.mxu1 %v5423_v9  ;;  %v5509_v8 = vld [vmem:[#allocation4 + $0xe0] ss:$8 sps:$4 sm:$0xff]   ;;  %v5514_v9 = vld [vmem:[#allocation4 + $0xf4] ss:$8 sps:$4 sm:$0xff]  }
 0x10b   :  { %1603 = vmatmul.mubr.bf16.vlgmr.msra.gmra.mrb[0].mxu0 %v4462_v13  ;;  %1767 = vmatmul.mubr.bf16.vlgmr.msra.gmra.mrb[0].mxu1 %v4462_v13  ;;  %v5563_v13 = vld [vmem:[#allocation6] ss:$16 sps:$4 sm:$0xff]  }
 0x10c   :  { %1612 = vmatpush1.bf16.msra.mxu0 %v5418_v10  ;;  %1776 = vmatpush1.bf16.msra.mxu1 %v5421_v12  ;;  %v5512_v10 = vld [vmem:[#allocation4 + $0xf0] ss:$8 sps:$4 sm:$0xff]   ;;  %v5517_v12 = vld [vmem:[#allocation4 + $0x104] ss:$8 sps:$4 sm:$0xff]  }
 0x10d   :  { %1613 = vmatprep.subr.bf16.mxu0 %v5426_v14  ;;  %1777 = vmatprep.subr.bf16.mxu1 %v5429_v15  ;;  %v5565_v14 = vld [vmem:[#allocation6 + $0x4] ss:$16 sps:$4 sm:$0xff]  }
 0x10e   :  { %1643 = vmatprep.mubr.bf16.mxu0 %v6051_v22  ;;  %1807 = vmatprep.mubr.bf16.mxu1 %v6051_v22  ;;  %v5568_v15 = vld [vmem:[#allocation6 + $0x24] ss:$16 sps:$4 sm:$0xff]  }
 0x110   :  { %1614 = vmatpush1.bf16.msra.mxu0 %v5424_v16  ;;  %1778 = vmatpush1.bf16.msra.mxu1 %v5427_v17  ;;  %v5566_v16 = vld [vmem:[#allocation6 + $0x20] ss:$16 sps:$4 sm:$0xff]   ;;  %v323_v17 = vlaneseq }
 0x111   :  { %1615 = vmatprep.subr.bf16.mxu0 %v5432_v18  ;;  %1779 = vmatprep.subr.bf16.mxu1 %v5435_v19 }
 0x112   :  { %v6194_v18 = vshrl.u32 %v323_v17, 7  ;;  %v5569_v17 = vld [vmem:[#allocation6 + $0x40] ss:$16 sps:$4 sm:$0xff]  }
 0x114   :  { %1616 = vmatpush1.bf16.msra.mxu0 %v5430_v20  ;;  %1780 = vmatpush1.bf16.msra.mxu1 %v5433_v21  ;;  %v6197_v19 = vsub.s32 0, %v6194_v18  ;;  %v6202_v20 = vld [vmem:[%s6312_s2] sm:$0xf]  ;;  %v6205_v21 = vsub.s32 1, %v6194_v18 }
 0x115   :  { %1617 = vmatprep.subr.bf16.mxu0 %v5438_v11  ;;  %1781 = vmatprep.subr.bf16.mxu1 %v5441_v23  ;;  %v6208_v11 = vsub.s32 3, %v6194_v18 }
 0x116   :  { %v326_v23 = vrot.slane %v6202_v20, %v6197_v19 }
 0x118   :  { %1618 = vmatpush1.bf16.msra.mxu0 %v5436_v24  ;;  %1782 = vmatpush1.bf16.msra.mxu1 %v5439_v25  ;;  %v330_v24 = vrot.slane %v6202_v20, %v6205_v21  ;;  %v338_v25 = vrot.slane %v6202_v20, %v6208_v11 }
 0x119   :  { %1619 = vmatprep.subr.bf16.mxu0 %v5444_v26  ;;  %1783 = vmatprep.subr.bf16.mxu1 %v5447_v27 }
 0x11c   :  { %1620 = vmatpush1.bf16.msra.mxu0 %v5442_v28  ;;  %1784 = vmatpush1.bf16.msra.mxu1 %v5445_v29 }
 0x11d   :  { %1621 = vmatprep.subr.bf16.mxu0 %v5450_v30  ;;  %1785 = vmatprep.subr.bf16.mxu1 %v5453_v31 }
 0x120   :  { %1622 = vmatpush1.bf16.msra.mxu0 %v5448_v32  ;;  %1786 = vmatpush1.bf16.msra.mxu1 %v5451_v33 }
 0x121   :  { %1623 = vmatprep.subr.bf16.mxu0 %v5456_v34  ;;  %1787 = vmatprep.subr.bf16.mxu1 %v5459_v35 }
 0x124   :  { %1624 = vmatpush1.bf16.msra.mxu0 %v5454_v36  ;;  %1788 = vmatpush1.bf16.msra.mxu1 %v5457_v37 }
 0x125   :  { %1625 = vmatprep.subr.bf16.mxu0 %v5462_v38  ;;  %1789 = vmatprep.subr.bf16.mxu1 %v5465_v39 }
 0x128   :  { %1626 = vmatpush1.bf16.msra.mxu0 %v5460_v40  ;;  %1790 = vmatpush1.bf16.msra.mxu1 %v5463_v41  ;;  %v5515_v41 = vld [vmem:[#allocation4 + $0x100] ss:$8 sps:$4 sm:$0xff]  }
 0x129   :  { %2220 = vmatprep.subr.bf16.mxu0 %v5469_v42  ;;  %2523 = vmatprep.subr.bf16.mxu1 %v5565_v14 }
 0x12b   :  { %1644 = vmatmul.mubr.bf16.vlgmr.msra.gmra.mrb[0].mxu0 %v5466_v43  ;;  %1808 = vmatmul.mubr.bf16.vlgmr.msra.gmra.mrb[0].mxu1 %v5466_v43  ;;  %v5520_v43 = vld [vmem:[#allocation4 + $0x114] ss:$8 sps:$4 sm:$0xff]  }
 0x12c   :  { %2221 = vmatpush1.bf16.msra.mxu0 %v5467_v44  ;;  %2555 = vmatprep.mubr.bf16.mxu1 %v6051_v22 }
 0x12d   :  { %2222 = vmatprep.subr.bf16.mxu0 %v5472_v45  ;;  %2524 = vmatpush1.bf16.msra.mxu1 %v5563_v13  ;;  %v5518_v45 = vld [vmem:[#allocation4 + $0x110] ss:$8 sps:$4 sm:$0xff]  }
 0x12e   :  { %2525 = vmatprep.subr.bf16.mxu1 %v5568_v15  ;;  %v5560_v13 = vld [vmem:[#allocation4 + $0x1f0] ss:$8 sps:$4 sm:$0xff]  }
 0x130   :  { %2223 = vmatpush1.bf16.msra.mxu0 %v5470_v46  ;;  %v5523_v46 = vld [vmem:[#allocation4 + $0x124] ss:$8 sps:$4 sm:$0xff]  }
 0x131   :  { %2224 = vmatprep.subr.bf16.mxu0 %v5475_v47  ;;  %2526 = vmatpush1.bf16.msra.mxu1 %v5566_v16  ;;  %v5521_v47 = vld [vmem:[#allocation4 + $0x120] ss:$8 sps:$4 sm:$0xff]   ;;  %v5571_v16 = vld [vmem:[#allocation6 + $0x44] ss:$16 sps:$4 sm:$0xff]  }
 0x132   :  { %2527 = vmatprep.subr.bf16.mxu1 %v5571_v16  ;;  %v5592_v16 = vld [vmem:[#allocation6 + $0x2c] ss:$16 sps:$4 sm:$0xff]  }
 0x134   :  { %2225 = vmatpush1.bf16.msra.mxu0 %v5473_v48  ;;  %v5526_v48 = vld [vmem:[#allocation4 + $0x134] ss:$8 sps:$4 sm:$0xff]  }
 0x135   :  { %2226 = vmatprep.subr.bf16.mxu0 %v5478_v49  ;;  %v5524_v49 = vld [vmem:[#allocation4 + $0x130] ss:$8 sps:$4 sm:$0xff]   ;;  %2528 = vmatpush1.bf16.msra.mxu1 %v5569_v17 }
 0x136   :  { %v5590_v17 = vld [vmem:[#allocation6 + $0x28] ss:$16 sps:$4 sm:$0xff]  }
 0x138   :  { %2227 = vmatpush1.bf16.msra.mxu0 %v5476_v50  ;;  %v5529_v50 = vld [vmem:[#allocation4 + $0x144] ss:$8 sps:$4 sm:$0xff]  }
 0x139   :  { %2228 = vmatprep.subr.bf16.mxu0 %v5481_v51  ;;  %v5527_v51 = vld [vmem:[#allocation4 + $0x140] ss:$8 sps:$4 sm:$0xff]  }
 0x13c   :  { %2229 = vmatpush1.bf16.msra.mxu0 %v5479_v52  ;;  %v5532_v52 = vld [vmem:[#allocation4 + $0x154] ss:$8 sps:$4 sm:$0xff]  }
 0x13d   :  { %2230 = vmatprep.subr.bf16.mxu0 %v5484_v53  ;;  %v5530_v53 = vld [vmem:[#allocation4 + $0x150] ss:$8 sps:$4 sm:$0xff]  }
 0x140   :  { %2231 = vmatpush1.bf16.msra.mxu0 %v5482_v54  ;;  %v5535_v54 = vld [vmem:[#allocation4 + $0x164] ss:$8 sps:$4 sm:$0xff]  }
 0x141   :  { %2232 = vmatprep.subr.bf16.mxu0 %v5487_v55  ;;  %v5533_v55 = vld [vmem:[#allocation4 + $0x160] ss:$8 sps:$4 sm:$0xff]  }
 0x144   :  { %2233 = vmatpush1.bf16.msra.mxu0 %v5485_v56  ;;  %v5538_v56 = vld [vmem:[#allocation4 + $0x174] ss:$8 sps:$4 sm:$0xff]  }
 0x145   :  { %2234 = vmatprep.subr.bf16.mxu0 %v5490_v57  ;;  %v5536_v57 = vld [vmem:[#allocation4 + $0x170] ss:$8 sps:$4 sm:$0xff]  }
 0x148   :  { %2235 = vmatpush1.bf16.msra.mxu0 %v5488_v58  ;;  %v5541_v58 = vld [vmem:[#allocation4 + $0x184] ss:$8 sps:$4 sm:$0xff]  }
 0x149   :  { %2236 = vmatprep.subr.bf16.mxu0 %v5493_v59  ;;  %v5539_v59 = vld [vmem:[#allocation4 + $0x180] ss:$8 sps:$4 sm:$0xff]  }
 0x14c   :  { %2237 = vmatpush1.bf16.msra.mxu0 %v5491_v60  ;;  %v5544_v60 = vld [vmem:[#allocation4 + $0x194] ss:$8 sps:$4 sm:$0xff]  }
 0x14d   :  { %2238 = vmatprep.subr.bf16.mxu0 %v5496_v61  ;;  %v5542_v61 = vld [vmem:[#allocation4 + $0x190] ss:$8 sps:$4 sm:$0xff]  }
 0x150   :  { %2239 = vmatpush1.bf16.msra.mxu0 %v5494_v62  ;;  %v5547_v62 = vld [vmem:[#allocation4 + $0x1a4] ss:$8 sps:$4 sm:$0xff]  }
 0x151   :  { %2240 = vmatprep.subr.bf16.mxu0 %v5499_v63  ;;  %v5545_v63 = vld [vmem:[#allocation4 + $0x1a0] ss:$8 sps:$4 sm:$0xff]  }
 0x154   :  { %2241 = vmatpush1.bf16.msra.mxu0 %v5497_v0  ;;  %v5550_v0 = vld [vmem:[#allocation4 + $0x1b4] ss:$8 sps:$4 sm:$0xff]  }
 0x155   :  { %2242 = vmatprep.subr.bf16.mxu0 %v5502_v1  ;;  %v5548_v1 = vld [vmem:[#allocation4 + $0x1b0] ss:$8 sps:$4 sm:$0xff]  }
 0x158   :  { %2243 = vmatpush1.bf16.msra.mxu0 %v5500_v2  ;;  %v5553_v2 = vld [vmem:[#allocation4 + $0x1c4] ss:$8 sps:$4 sm:$0xff]  }
 0x159   :  { %2244 = vmatprep.subr.bf16.mxu0 %v5505_v3  ;;  %v5551_v3 = vld [vmem:[#allocation4 + $0x1c0] ss:$8 sps:$4 sm:$0xff]  }
 0x15c   :  { %2245 = vmatpush1.bf16.msra.mxu0 %v5503_v4  ;;  %v6219_v4 = vsub.s32 2, %v6194_v18 }
 0x15d   :  { %2246 = vmatprep.subr.bf16.mxu0 %v5508_v5  ;;  %v5556_v5 = vld [vmem:[#allocation4 + $0x1d4] ss:$8 sps:$4 sm:$0xff]  }
 0x160   :  { %2247 = vmatpush1.bf16.msra.mxu0 %v5506_v6  ;;  %v5554_v6 = vld [vmem:[#allocation4 + $0x1d0] ss:$8 sps:$4 sm:$0xff]  }
 0x161   :  { %2248 = vmatprep.subr.bf16.mxu0 %v5511_v7  ;;  %v334_v7 = vrot.slane %v6202_v20, %v6219_v4  ;;  %v5574_v20 = vld [vmem:[#allocation6 + $0x64] ss:$16 sps:$4 sm:$0xff]  }
 0x162   :  { %2529 = vmatprep.subr.bf16.mxu1 %v5574_v20  ;;  %v5595_v20 = vld [vmem:[#allocation6 + $0x4c] ss:$16 sps:$4 sm:$0xff]  }
 0x164   :  { %2249 = vmatpush1.bf16.msra.mxu0 %v5509_v8  ;;  %v5559_v8 = vld [vmem:[#allocation4 + $0x1e4] ss:$8 sps:$4 sm:$0xff]  }
 0x165   :  { %2250 = vmatprep.subr.bf16.mxu0 %v5514_v9  ;;  %v5557_v9 = vld [vmem:[#allocation4 + $0x1e0] ss:$8 sps:$4 sm:$0xff]  }
 0x168   :  { %2251 = vmatpush1.bf16.msra.mxu0 %v5512_v10 }
 0x169   :  { %2261 = vmatprep.subr.bf16.mxu0 %v5517_v12  ;;  %v5562_v12 = vld [vmem:[#allocation4 + $0x1f4] ss:$8 sps:$4 sm:$0xff]  }
 0x1fe   :  { %v1645_v26 = vpop.f32.mrb[0].mxu0  ;;  %v6216_v27 = vpop.f32.mrb[0].mxu1 }
 0x1ff   :  { %v5061_v28 = vadd.f32 %v1645_v26, %v326_v23  ;;  %v1647_v29 = vpop.f32.mrb[1].mxu0  ;;  %v1811_v30 = vpop.f32.mrb[1].mxu1  ;;  %v5063_v10 = vadd.f32 %v6216_v27, %v334_v7  ;;  %v5572_v23 = vld [vmem:[#allocation6 + $0x60] ss:$16 sps:$4 sm:$0xff]   ;;  %v5580_v26 = vld [vmem:[#allocation6 + $0xa4] ss:$16 sps:$4 sm:$0xff]  }
 0x200   :  { %v5062_v31 = vadd.f32 %v1647_v29, %v330_v24  ;;  %v5064_v32 = vadd.f32 %v1811_v30, %v338_v25  ;;  %v1649_v33 = vpop.f32.mrb[2].mxu0  ;;  %v1813_v34 = vpop.f32.mrb[2].mxu1  ;;  %2530 = vmatpush1.bf16.msra.mxu1 %v5572_v23  ;;  %v5577_v24 = vld [vmem:[#allocation6 + $0x84] ss:$16 sps:$4 sm:$0xff]   ;;  %v5575_v25 = vld [vmem:[#allocation6 + $0x80] ss:$16 sps:$4 sm:$0xff]  }
 0x201   :  { %v1816_v35 = vmax.f32 %v5061_v28, 0.0  ;;  %v1650_v36 = vpop.f32.mrb[3].mxu0  ;;  %v1814_v37 = vpop.f32.mrb[3].mxu1  ;;  %v1818_v14 = vmax.f32 %v5063_v10, 0.0  ;;  %2531 = vmatprep.subr.bf16.mxu1 %v5577_v24  ;;  %v5578_v27 = vld [vmem:[#allocation6 + $0xa0] ss:$16 sps:$4 sm:$0xff]  }
 0x202   :  { %v1817_v38 = vmax.f32 %v5062_v31, 0.0  ;;  %v1819_v39 = vmax.f32 %v5064_v32, 0.0  ;;  %v5583_v28 = vld [vmem:[#allocation6 + $0xc4] ss:$16 sps:$4 sm:$0xff]   ;;  %v5581_v29 = vld [vmem:[#allocation6 + $0xc0] ss:$16 sps:$4 sm:$0xff]  }
 0x203   :  { %v1820_v42 = vpack.c.bf16 %v1816_v35, %v1816_v35  ;;  %v1822_v15 = vpack.c.bf16 %v1818_v14, %v1818_v14  ;;  %v5586_v30 = vld [vmem:[#allocation6 + $0xe4] ss:$16 sps:$4 sm:$0xff]   ;;  %v5584_v31 = vld [vmem:[#allocation6 + $0xe0] ss:$16 sps:$4 sm:$0xff]   ;;  %v5589_v32 = vld [vmem:[#allocation6 + $0xc] ss:$16 sps:$4 sm:$0xff]  }
 0x204   :  { %v1821_v40 = vpack.c.bf16 %v1817_v38, %v1817_v38  ;;  %v1823_v44 = vpack.c.bf16 %v1819_v39, %v1819_v39  ;;  %2532 = vmatpush1.bf16.msra.mxu1 %v5575_v25  ;;  %v5614_v33 = vld [vmem:[#allocation7 + $0x8] ss:$28 sps:$4 sm:$0xff]   ;;  %v5620_v36 = vld [vmem:[#allocation7 + $0x40] ss:$28 sps:$4 sm:$0xff]   ;;  %v5626_v38 = vld [vmem:[#allocation7 + $0x78] ss:$28 sps:$4 sm:$0xff]  }
 0x205   :  { %2533 = vmatprep.subr.bf16.mxu1 %v5580_v26  ;;  %v5616_v34 = vld [vmem:[#allocation7 + $0xc] ss:$28 sps:$4 sm:$0xff]   ;;  %v5622_v35 = vld [vmem:[#allocation7 + $0x44] ss:$28 sps:$4 sm:$0xff]   ;;  %v5628_v37 = vld [vmem:[#allocation7 + $0x7c] ss:$28 sps:$4 sm:$0xff]  }
 0x206   :  { %2252 = vmatprep.mubr.bf16.mxu0 %v1821_v40  ;;  %v5634_v39 = vld [vmem:[#allocation7 + $0xb4] ss:$28 sps:$4 sm:$0xff]   ;;  %v5587_v14 = vld [vmem:[#allocation6 + $0x8] ss:$16 sps:$4 sm:$0xff]   ;;  %v5598_v24 = vld [vmem:[#allocation6 + $0x6c] ss:$16 sps:$4 sm:$0xff]  }
 0x207   :  { %2253 = vmatmul.mubr.bf16.vlgmr.msra.gmra.mrb[4].mxu0 %v1820_v42  ;;  %v5632_v40 = vld [vmem:[#allocation7 + $0xb0] ss:$28 sps:$4 sm:$0xff]   ;;  %v5638_v42 = vld [vmem:[#allocation7 + $0xe8] ss:$28 sps:$4 sm:$0xff]  }
 0x208   :  { %2262 = vmatpush1.bf16.msra.mxu0 %v5515_v41  ;;  %2293 = vmatprep.mubr.bf16.mxu0 %v1823_v44  ;;  %v5640_v41 = vld [vmem:[#allocation7 + $0xec] ss:$28 sps:$4 sm:$0xff]   ;;  %v5644_v44 = vld [vmem:[#allocation7 + $0x120] ss:$28 sps:$4 sm:$0xff]  }
 0x209   :  { %2263 = vmatprep.subr.bf16.mxu0 %v5520_v43  ;;  %2534 = vmatpush1.bf16.msra.mxu1 %v5578_v27  ;;  %v5646_v43 = vld [vmem:[#allocation7 + $0x124] ss:$28 sps:$4 sm:$0xff]   ;;  %v5593_v23 = vld [vmem:[#allocation6 + $0x48] ss:$16 sps:$4 sm:$0xff]   ;;  %v5601_v26 = vld [vmem:[#allocation6 + $0x8c] ss:$16 sps:$4 sm:$0xff]  }
 0x20a   :  { %2535 = vmatprep.subr.bf16.mxu1 %v5583_v28  ;;  %v5596_v25 = vld [vmem:[#allocation6 + $0x68] ss:$16 sps:$4 sm:$0xff]   ;;  %v5604_v28 = vld [vmem:[#allocation6 + $0xac] ss:$16 sps:$4 sm:$0xff]  }
 0x20b   :  { %v5599_v27 = vld [vmem:[#allocation6 + $0x88] ss:$16 sps:$4 sm:$0xff]  }
 0x20c   :  { %2264 = vmatpush1.bf16.msra.mxu0 %v5518_v45  ;;  %v5652_v45 = vld [vmem:[#allocation7 + $0x15c] ss:$28 sps:$4 sm:$0xff]  }
 0x20d   :  { %2265 = vmatprep.subr.bf16.mxu0 %v5523_v46  ;;  %2536 = vmatpush1.bf16.msra.mxu1 %v5581_v29  ;;  %v5650_v46 = vld [vmem:[#allocation7 + $0x158] ss:$28 sps:$4 sm:$0xff]  }
 0x20e   :  { %2537 = vmatprep.subr.bf16.mxu1 %v5586_v30  ;;  %v5602_v29 = vld [vmem:[#allocation6 + $0xa8] ss:$16 sps:$4 sm:$0xff]   ;;  %v5607_v30 = vld [vmem:[#allocation6 + $0xcc] ss:$16 sps:$4 sm:$0xff]  }
 0x210   :  { %2266 = vmatpush1.bf16.msra.mxu0 %v5521_v47  ;;  %v5658_v47 = vld [vmem:[#allocation7 + $0x194] ss:$28 sps:$4 sm:$0xff]  }
 0x211   :  { %2267 = vmatprep.subr.bf16.mxu0 %v5526_v48  ;;  %2538 = vmatpush1.bf16.msra.mxu1 %v5584_v31  ;;  %v5656_v48 = vld [vmem:[#allocation7 + $0x190] ss:$28 sps:$4 sm:$0xff]  }
 0x212   :  { %2564 = vmatprep.subr.bf16.mxu1 %v5589_v32  ;;  %v5610_v31 = vld [vmem:[#allocation6 + $0xec] ss:$16 sps:$4 sm:$0xff]   ;;  %v5608_v32 = vld [vmem:[#allocation6 + $0xe8] ss:$16 sps:$4 sm:$0xff]  }
 0x214   :  { %2268 = vmatpush1.bf16.msra.mxu0 %v5524_v49  ;;  %v5664_v49 = vld [vmem:[#allocation7 + $0x1cc] ss:$28 sps:$4 sm:$0xff]  }
 0x215   :  { %2269 = vmatprep.subr.bf16.mxu0 %v5529_v50  ;;  %v5662_v50 = vld [vmem:[#allocation7 + $0x1c8] ss:$28 sps:$4 sm:$0xff]  }
 0x218   :  { %2270 = vmatpush1.bf16.msra.mxu0 %v5527_v51  ;;  %v5670_v51 = vld [vmem:[#allocation7 + $0x204] ss:$28 sps:$4 sm:$0xff]  }
 0x219   :  { %2271 = vmatprep.subr.bf16.mxu0 %v5532_v52  ;;  %v5668_v52 = vld [vmem:[#allocation7 + $0x200] ss:$28 sps:$4 sm:$0xff]  }
 0x21c   :  { %2272 = vmatpush1.bf16.msra.mxu0 %v5530_v53  ;;  %v5676_v53 = vld [vmem:[#allocation7 + $0x23c] ss:$28 sps:$4 sm:$0xff]  }
 0x21d   :  { %2273 = vmatprep.subr.bf16.mxu0 %v5535_v54  ;;  %v5674_v54 = vld [vmem:[#allocation7 + $0x238] ss:$28 sps:$4 sm:$0xff]  }
 0x220   :  { %2274 = vmatpush1.bf16.msra.mxu0 %v5533_v55  ;;  %v5682_v55 = vld [vmem:[#allocation7 + $0x274] ss:$28 sps:$4 sm:$0xff]  }
 0x221   :  { %2275 = vmatprep.subr.bf16.mxu0 %v5538_v56  ;;  %v5680_v56 = vld [vmem:[#allocation7 + $0x270] ss:$28 sps:$4 sm:$0xff]  }
 0x224   :  { %2276 = vmatpush1.bf16.msra.mxu0 %v5536_v57  ;;  %v5688_v57 = vld [vmem:[#allocation7 + $0x2ac] ss:$28 sps:$4 sm:$0xff]  }
 0x225   :  { %2277 = vmatprep.subr.bf16.mxu0 %v5541_v58  ;;  %v5686_v58 = vld [vmem:[#allocation7 + $0x2a8] ss:$28 sps:$4 sm:$0xff]  }
 0x228   :  { %2278 = vmatpush1.bf16.msra.mxu0 %v5539_v59  ;;  %v5694_v59 = vld [vmem:[#allocation7 + $0x2e4] ss:$28 sps:$4 sm:$0xff]  }
 0x229   :  { %2279 = vmatprep.subr.bf16.mxu0 %v5544_v60  ;;  %v5692_v60 = vld [vmem:[#allocation7 + $0x2e0] ss:$28 sps:$4 sm:$0xff]  }
 0x22c   :  { %2280 = vmatpush1.bf16.msra.mxu0 %v5542_v61  ;;  %v1888_v61 = vld [vmem:[%s6314_s4] sm:$0x3] }
 0x22d   :  { %2281 = vmatprep.subr.bf16.mxu0 %v5547_v62  ;;  %v1893_v62 = vrot.slane %v1888_v61, %v6197_v19 }
 0x230   :  { %2282 = vmatpush1.bf16.msra.mxu0 %v5545_v63  ;;  %v1897_v63 = vrot.slane %v1888_v61, %v6205_v21  ;;  %v5697_v61 = vld [vmem:[#allocation7 + $0x314] ss:$28 sps:$4 sm:$0xff]  }
 0x231   :  { %2283 = vmatprep.subr.bf16.mxu0 %v5550_v0 }
 0x234   :  { %2284 = vmatpush1.bf16.msra.mxu0 %v5548_v1 }
 0x235   :  { %2285 = vmatprep.subr.bf16.mxu0 %v5553_v2 }
 0x238   :  { %2286 = vmatpush1.bf16.msra.mxu0 %v5551_v3 }
 0x239   :  { %2287 = vmatprep.subr.bf16.mxu0 %v5556_v5 }
 0x23c   :  { %2288 = vmatpush1.bf16.msra.mxu0 %v5554_v6 }
 0x23d   :  { %2289 = vmatprep.subr.bf16.mxu0 %v5559_v8 }
 0x240   :  { %2290 = vmatpush1.bf16.msra.mxu0 %v5557_v9  ;;  %v2302_v9 = vld [vmem:[%s6319_s9] sm:$0xff] }
 0x241   :  { %2291 = vmatprep.subr.bf16.mxu0 %v5562_v12 }
 0x244   :  { %2292 = vmatpush1.bf16.msra.mxu0 %v5560_v13 }
 0x245   :  { %4140 = vmatprep.subr.bf16.mxu0 %v5616_v34  ;;  %v5611_v34 = vld [vmem:[#allocation7] ss:$28 sps:$4 sm:$0xff]  }
 0x247   :  { %2294 = vmatmul.mubr.bf16.vlgmr.msra.gmra.mrb[4].mxu0 %v1822_v15 }
 0x248   :  { %4141 = vmatpush1.bf16.msra.mxu0 %v5614_v33  ;;  %v5613_v33 = vld [vmem:[#allocation7 + $0x4] ss:$28 sps:$4 sm:$0xff]  }
 0x249   :  { %4142 = vmatprep.subr.bf16.mxu0 %v5622_v35  ;;  %v5619_v35 = vld [vmem:[#allocation7 + $0x3c] ss:$28 sps:$4 sm:$0xff]  }
 0x24c   :  { %4143 = vmatpush1.bf16.msra.mxu0 %v5620_v36  ;;  %v5617_v36 = vld [vmem:[#allocation7 + $0x38] ss:$28 sps:$4 sm:$0xff]  }
 0x24d   :  { %4144 = vmatprep.subr.bf16.mxu0 %v5628_v37  ;;  %v5625_v37 = vld [vmem:[#allocation7 + $0x74] ss:$28 sps:$4 sm:$0xff]  }
 0x250   :  { %4145 = vmatpush1.bf16.msra.mxu0 %v5626_v38  ;;  %v5623_v38 = vld [vmem:[#allocation7 + $0x70] ss:$28 sps:$4 sm:$0xff]  }
 0x251   :  { %4146 = vmatprep.subr.bf16.mxu0 %v5634_v39  ;;  %v5631_v39 = vld [vmem:[#allocation7 + $0xac] ss:$28 sps:$4 sm:$0xff]  }
 0x254   :  { %4147 = vmatpush1.bf16.msra.mxu0 %v5632_v40  ;;  %v5629_v40 = vld [vmem:[#allocation7 + $0xa8] ss:$28 sps:$4 sm:$0xff]  }
 0x255   :  { %4148 = vmatprep.subr.bf16.mxu0 %v5640_v41  ;;  %v5637_v41 = vld [vmem:[#allocation7 + $0xe4] ss:$28 sps:$4 sm:$0xff]  }
 0x258   :  { %4149 = vmatpush1.bf16.msra.mxu0 %v5638_v42  ;;  %v5635_v42 = vld [vmem:[#allocation7 + $0xe0] ss:$28 sps:$4 sm:$0xff]  }
 0x259   :  { %4150 = vmatprep.subr.bf16.mxu0 %v5646_v43  ;;  %v5643_v43 = vld [vmem:[#allocation7 + $0x11c] ss:$28 sps:$4 sm:$0xff]  }
 0x25c   :  { %4151 = vmatpush1.bf16.msra.mxu0 %v5644_v44  ;;  %v5641_v44 = vld [vmem:[#allocation7 + $0x118] ss:$28 sps:$4 sm:$0xff]  }
 0x25d   :  { %4152 = vmatprep.subr.bf16.mxu0 %v5652_v45  ;;  %v5649_v45 = vld [vmem:[#allocation7 + $0x154] ss:$28 sps:$4 sm:$0xff]  }
 0x260   :  { %4153 = vmatpush1.bf16.msra.mxu0 %v5650_v46  ;;  %v5647_v46 = vld [vmem:[#allocation7 + $0x150] ss:$28 sps:$4 sm:$0xff]  }
 0x261   :  { %4154 = vmatprep.subr.bf16.mxu0 %v5658_v47  ;;  %v5655_v47 = vld [vmem:[#allocation7 + $0x18c] ss:$28 sps:$4 sm:$0xff]  }
 0x264   :  { %4155 = vmatpush1.bf16.msra.mxu0 %v5656_v48  ;;  %v5653_v48 = vld [vmem:[#allocation7 + $0x188] ss:$28 sps:$4 sm:$0xff]  }
 0x265   :  { %4156 = vmatprep.subr.bf16.mxu0 %v5664_v49  ;;  %v5661_v49 = vld [vmem:[#allocation7 + $0x1c4] ss:$28 sps:$4 sm:$0xff]  }
 0x268   :  { %4157 = vmatpush1.bf16.msra.mxu0 %v5662_v50  ;;  %v5659_v50 = vld [vmem:[#allocation7 + $0x1c0] ss:$28 sps:$4 sm:$0xff]  }
 0x269   :  { %4158 = vmatprep.subr.bf16.mxu0 %v5670_v51  ;;  %v5667_v51 = vld [vmem:[#allocation7 + $0x1fc] ss:$28 sps:$4 sm:$0xff]  }
 0x26c   :  { %4159 = vmatpush1.bf16.msra.mxu0 %v5668_v52  ;;  %v5665_v52 = vld [vmem:[#allocation7 + $0x1f8] ss:$28 sps:$4 sm:$0xff]  }
 0x26d   :  { %4160 = vmatprep.subr.bf16.mxu0 %v5676_v53  ;;  %v5673_v53 = vld [vmem:[#allocation7 + $0x234] ss:$28 sps:$4 sm:$0xff]  }
 0x270   :  { %4161 = vmatpush1.bf16.msra.mxu0 %v5674_v54  ;;  %v5671_v54 = vld [vmem:[#allocation7 + $0x230] ss:$28 sps:$4 sm:$0xff]  }
 0x271   :  { %4162 = vmatprep.subr.bf16.mxu0 %v5682_v55  ;;  %v5679_v55 = vld [vmem:[#allocation7 + $0x26c] ss:$28 sps:$4 sm:$0xff]  }
 0x274   :  { %4163 = vmatpush1.bf16.msra.mxu0 %v5680_v56  ;;  %v5677_v56 = vld [vmem:[#allocation7 + $0x268] ss:$28 sps:$4 sm:$0xff]  }
 0x275   :  { %4164 = vmatprep.subr.bf16.mxu0 %v5688_v57  ;;  %v5685_v57 = vld [vmem:[#allocation7 + $0x2a4] ss:$28 sps:$4 sm:$0xff]  }
 0x278   :  { %4165 = vmatpush1.bf16.msra.mxu0 %v5686_v58  ;;  %v5683_v58 = vld [vmem:[#allocation7 + $0x2a0] ss:$28 sps:$4 sm:$0xff]  }
 0x279   :  { %4166 = vmatprep.subr.bf16.mxu0 %v5694_v59  ;;  %v5691_v59 = vld [vmem:[#allocation7 + $0x2dc] ss:$28 sps:$4 sm:$0xff]  }
 0x27c   :  { %4167 = vmatpush1.bf16.msra.mxu0 %v5692_v60  ;;  %v5689_v60 = vld [vmem:[#allocation7 + $0x2d8] ss:$28 sps:$4 sm:$0xff]  }
 0x31a   :  { %v2295_v0 = vpop.f32.mrb[4].mxu0 }
 0x31b   :  { %v5065_v1 = vadd.f32 %v2295_v0, %v1893_v62  ;;  %v2297_v2 = vpop.f32.mrb[5].mxu0  ;;  %v5700_v62 = vld [vmem:[#allocation7 + $0x31c] ss:$28 sps:$4 sm:$0xff]   ;;  %v5695_v0 = vld [vmem:[#allocation7 + $0x310] ss:$28 sps:$4 sm:$0xff]  }
 0x31c   :  { %v5066_v3 = vadd.f32 %v2297_v2, %v1897_v63  ;;  %v2299_v5 = vpop.f32.mrb[6].mxu0  ;;  %v5698_v63 = vld [vmem:[#allocation7 + $0x318] ss:$28 sps:$4 sm:$0xff]   ;;  %4168 = vmatprep.subr.bf16.mxu0 %v5700_v62  ;;  %v5760_v62 = vld [vmem:[#allocation7 + $0x54c] ss:$28 sps:$4 sm:$0xff]  }
 0x31d   :  { %4445 = vst [vmem:[%s6321_s11] sm:$0xff] %v5065_v1  ;;  %v2300_v6 = vpop.f32.mrb[7].mxu0  ;;  %4169 = vmatpush1.bf16.msra.mxu0 %v5698_v63  ;;  %v5706_v2 = vld [vmem:[#allocation7 + $0x354] ss:$28 sps:$4 sm:$0xff]   ;;  %v5701_v5 = vld [vmem:[#allocation7 + $0x348] ss:$28 sps:$4 sm:$0xff]  }
 0x31e   :  { %v2303_v7 = vmul.f32 0.5, %v5066_v3  ;;  %4446 = vst [vmem:[%s6321_s11 + $0x8] sm:$0xff] %v5066_v3  ;;  %v5704_v3 = vld [vmem:[#allocation7 + $0x350] ss:$28 sps:$4 sm:$0xff]   ;;  %4170 = vmatprep.subr.bf16.mxu0 %v5706_v2  ;;  %v5709_v6 = vld [vmem:[#allocation7 + $0x384] ss:$28 sps:$4 sm:$0xff]  }
 0x31f   :  { %v5758_v2 = vld [vmem:[#allocation7 + $0x548] ss:$28 sps:$4 sm:$0xff]  }
 0x320   :  { %v2304_v8 = vmul.f32 1.442695, %v2303_v7  ;;  %v5712_v7 = vld [vmem:[#allocation7 + $0x38c] ss:$28 sps:$4 sm:$0xff]  }
 0x321   :  { %4171 = vmatpush1.bf16.msra.mxu0 %v5704_v3  ;;  %v5763_v3 = vld [vmem:[#allocation7 + $0x57c] ss:$28 sps:$4 sm:$0xff]  }
 0x322   :  { %5931 = vpow2.f32 %v2304_v8  ;;  %4181 = vmatprep.subr.bf16.mxu0 %v5712_v7  ;;  %v6242_v8 = vld [vmem:[%s6316_s6] sm:$0xf] }
 0x323   :  { %v5764_v7 = vld [vmem:[#allocation7 + $0x580] ss:$28 sps:$4 sm:$0xff]  }
 0x32c   :  { %v5932_v10 = vpop.eup %5931 }
 0x32d   :  { %v2306_v12 = vmul.f32 %v5932_v10, %v2302_v9  ;;  %v2346_v9 = vrot.slane %v6242_v8, %v6197_v19  ;;  %v2350_v10 = vrot.slane %v6242_v8, %v6205_v21 }
 0x32f   :  { %v2307_v13 = vadd.f32 %v5065_v1, %v2306_v12  ;;  %v5703_v1 = vld [vmem:[#allocation7 + $0x34c] ss:$28 sps:$4 sm:$0xff]  }
 0x331   :  { %v2308_v15 = vpack.c.bf16 %v2307_v13, %v2307_v13 }
 0x333   :  { %2556 = vmatmul.mubr.bf16.vlgmr.msra.gmra.mrb[4].mxu1 %v2308_v15 }
 0x334   :  { %2565 = vmatpush1.bf16.msra.mxu1 %v5587_v14  ;;  %2596 = vmatprep.mubr.bf16.mxu1 %v6051_v22  ;;  %v5605_v22 = vld [vmem:[#allocation6 + $0xc8] ss:$16 sps:$4 sm:$0xff]  }
 0x335   :  { %2566 = vmatprep.subr.bf16.mxu1 %v5592_v16 }
 0x338   :  { %2567 = vmatpush1.bf16.msra.mxu1 %v5590_v17 }
 0x339   :  { %2568 = vmatprep.subr.bf16.mxu1 %v5595_v20 }
 0x33c   :  { %2569 = vmatpush1.bf16.msra.mxu1 %v5593_v23 }
 0x33d   :  { %2570 = vmatprep.subr.bf16.mxu1 %v5598_v24 }
 0x340   :  { %2571 = vmatpush1.bf16.msra.mxu1 %v5596_v25  ;;  %v5707_v25 = vld [vmem:[#allocation7 + $0x380] ss:$28 sps:$4 sm:$0xff]  }
 0x341   :  { %2572 = vmatprep.subr.bf16.mxu1 %v5601_v26  ;;  %v5710_v26 = vld [vmem:[#allocation7 + $0x388] ss:$28 sps:$4 sm:$0xff]  }
 0x344   :  { %2573 = vmatpush1.bf16.msra.mxu1 %v5599_v27 }
 0x345   :  { %2574 = vmatprep.subr.bf16.mxu1 %v5604_v28  ;;  %v5715_v28 = vld [vmem:[#allocation7 + $0x3bc] ss:$28 sps:$4 sm:$0xff]  }
 0x348   :  { %2575 = vmatpush1.bf16.msra.mxu1 %v5602_v29  ;;  %v5718_v29 = vld [vmem:[#allocation7 + $0x3c4] ss:$28 sps:$4 sm:$0xff]  }
 0x349   :  { %2576 = vmatprep.subr.bf16.mxu1 %v5607_v30  ;;  %v5713_v30 = vld [vmem:[#allocation7 + $0x3b8] ss:$28 sps:$4 sm:$0xff]  }
 0x34c   :  { %2577 = vmatpush1.bf16.msra.mxu1 %v5605_v22  ;;  %v5716_v22 = vld [vmem:[#allocation7 + $0x3c0] ss:$28 sps:$4 sm:$0xff]  }
 0x34d   :  { %2578 = vmatprep.subr.bf16.mxu1 %v5610_v31  ;;  %v5721_v31 = vld [vmem:[#allocation7 + $0x3f4] ss:$28 sps:$4 sm:$0xff]  }
 0x350   :  { %2579 = vmatpush1.bf16.msra.mxu1 %v5608_v32  ;;  %v5724_v32 = vld [vmem:[#allocation7 + $0x3fc] ss:$28 sps:$4 sm:$0xff]  }
 0x351   :  { %4058 = vmatprep.subr.bf16.mxu1 %v5613_v33  ;;  %v5719_v33 = vld [vmem:[#allocation7 + $0x3f0] ss:$28 sps:$4 sm:$0xff]  }
 0x353   :  { %2597 = vmatmul.mubr.bf16.vlgmr.msra.gmra.mrb[8].mxu1 %v2308_v15 }
 0x354   :  { %4059 = vmatpush1.bf16.msra.mxu1 %v5611_v34  ;;  %v5722_v34 = vld [vmem:[#allocation7 + $0x3f8] ss:$28 sps:$4 sm:$0xff]  }
 0x355   :  { %4060 = vmatprep.subr.bf16.mxu1 %v5619_v35  ;;  %v5727_v35 = vld [vmem:[#allocation7 + $0x42c] ss:$28 sps:$4 sm:$0xff]  }
 0x358   :  { %4061 = vmatpush1.bf16.msra.mxu1 %v5617_v36  ;;  %v5730_v36 = vld [vmem:[#allocation7 + $0x434] ss:$28 sps:$4 sm:$0xff]  }
 0x359   :  { %4062 = vmatprep.subr.bf16.mxu1 %v5625_v37  ;;  %v5725_v37 = vld [vmem:[#allocation7 + $0x428] ss:$28 sps:$4 sm:$0xff]  }
 0x35c   :  { %4063 = vmatpush1.bf16.msra.mxu1 %v5623_v38  ;;  %v5728_v38 = vld [vmem:[#allocation7 + $0x430] ss:$28 sps:$4 sm:$0xff]  }
 0x35d   :  { %4064 = vmatprep.subr.bf16.mxu1 %v5631_v39  ;;  %v5733_v39 = vld [vmem:[#allocation7 + $0x464] ss:$28 sps:$4 sm:$0xff]  }
 0x360   :  { %4065 = vmatpush1.bf16.msra.mxu1 %v5629_v40  ;;  %v5736_v40 = vld [vmem:[#allocation7 + $0x46c] ss:$28 sps:$4 sm:$0xff]  }
 0x361   :  { %4066 = vmatprep.subr.bf16.mxu1 %v5637_v41  ;;  %v5731_v41 = vld [vmem:[#allocation7 + $0x460] ss:$28 sps:$4 sm:$0xff]  }
 0x364   :  { %4067 = vmatpush1.bf16.msra.mxu1 %v5635_v42  ;;  %v5734_v42 = vld [vmem:[#allocation7 + $0x468] ss:$28 sps:$4 sm:$0xff]  }
 0x365   :  { %4068 = vmatprep.subr.bf16.mxu1 %v5643_v43  ;;  %v5739_v43 = vld [vmem:[#allocation7 + $0x49c] ss:$28 sps:$4 sm:$0xff]  }
 0x368   :  { %4069 = vmatpush1.bf16.msra.mxu1 %v5641_v44  ;;  %v5742_v44 = vld [vmem:[#allocation7 + $0x4a4] ss:$28 sps:$4 sm:$0xff]  }
 0x369   :  { %4070 = vmatprep.subr.bf16.mxu1 %v5649_v45  ;;  %v5737_v45 = vld [vmem:[#allocation7 + $0x498] ss:$28 sps:$4 sm:$0xff]  }
 0x36c   :  { %4071 = vmatpush1.bf16.msra.mxu1 %v5647_v46  ;;  %v5740_v46 = vld [vmem:[#allocation7 + $0x4a0] ss:$28 sps:$4 sm:$0xff]  }
 0x36d   :  { %4072 = vmatprep.subr.bf16.mxu1 %v5655_v47  ;;  %v5745_v47 = vld [vmem:[#allocation7 + $0x4d4] ss:$28 sps:$4 sm:$0xff]  }
 0x370   :  { %4073 = vmatpush1.bf16.msra.mxu1 %v5653_v48  ;;  %v5748_v48 = vld [vmem:[#allocation7 + $0x4dc] ss:$28 sps:$4 sm:$0xff]  }
 0x371   :  { %4074 = vmatprep.subr.bf16.mxu1 %v5661_v49  ;;  %v2358_v49 = vrot.slane %v6242_v8, %v6208_v11 }
 0x374   :  { %4075 = vmatpush1.bf16.msra.mxu1 %v5659_v50  ;;  %v5743_v50 = vld [vmem:[#allocation7 + $0x4d0] ss:$28 sps:$4 sm:$0xff]  }
 0x375   :  { %4076 = vmatprep.subr.bf16.mxu1 %v5667_v51  ;;  %v5746_v51 = vld [vmem:[#allocation7 + $0x4d8] ss:$28 sps:$4 sm:$0xff]  }
 0x378   :  { %4077 = vmatpush1.bf16.msra.mxu1 %v5665_v52  ;;  %v5751_v52 = vld [vmem:[#allocation7 + $0x50c] ss:$28 sps:$4 sm:$0xff]  }
 0x379   :  { %4078 = vmatprep.subr.bf16.mxu1 %v5673_v53  ;;  %v5754_v53 = vld [vmem:[#allocation7 + $0x514] ss:$28 sps:$4 sm:$0xff]  }
 0x37c   :  { %4079 = vmatpush1.bf16.msra.mxu1 %v5671_v54 }
 0x37d   :  { %4080 = vmatprep.subr.bf16.mxu1 %v5679_v55 }
 0x380   :  { %4081 = vmatpush1.bf16.msra.mxu1 %v5677_v56 }
 0x381   :  { %4082 = vmatprep.subr.bf16.mxu1 %v5685_v57 }
 0x384   :  { %4083 = vmatpush1.bf16.msra.mxu1 %v5683_v58  ;;  %v5749_v58 = vld [vmem:[#allocation7 + $0x508] ss:$28 sps:$4 sm:$0xff]  }
 0x385   :  { %4084 = vmatprep.subr.bf16.mxu1 %v5691_v59  ;;  %v5752_v59 = vld [vmem:[#allocation7 + $0x510] ss:$28 sps:$4 sm:$0xff]  }
 0x388   :  { %4085 = vmatpush1.bf16.msra.mxu1 %v5689_v60 }
 0x389   :  { %4086 = vmatprep.subr.bf16.mxu1 %v5697_v61  ;;  %v5757_v61 = vld [vmem:[#allocation7 + $0x544] ss:$28 sps:$4 sm:$0xff]  }
 0x38c   :  { %4087 = vmatpush1.bf16.msra.mxu1 %v5695_v0 }
 0x38d   :  { %4088 = vmatprep.subr.bf16.mxu1 %v5703_v1  ;;  %v5755_v1 = vld [vmem:[#allocation7 + $0x540] ss:$28 sps:$4 sm:$0xff]  }
 0x390   :  { %4089 = vmatpush1.bf16.msra.mxu1 %v5701_v5  ;;  %v5766_v5 = vld [vmem:[#allocation7 + $0x584] ss:$28 sps:$4 sm:$0xff]  }
 0x391   :  { %4099 = vmatprep.subr.bf16.mxu1 %v5709_v6  ;;  %v5761_v6 = vld [vmem:[#allocation7 + $0x578] ss:$28 sps:$4 sm:$0xff]  }
 0x406   :  { %v2557_v12 = vpop.f32.mrb[4].mxu1 }
 0x407   :  { %v2558_v13 = vadd.f32 %v2557_v12, %v2346_v9  ;;  %v2559_v14 = vpop.f32.mrb[5].mxu1  ;;  %v5769_v9 = vld [vmem:[#allocation7 + $0x5b4] ss:$28 sps:$4 sm:$0xff]  }
 0x408   :  { %v2560_v15 = vadd.f32 %v2559_v14, %v2350_v10  ;;  %v2561_v16 = vpop.f32.mrb[6].mxu1  ;;  %v5772_v10 = vld [vmem:[#allocation7 + $0x5bc] ss:$28 sps:$4 sm:$0xff]   ;;  %v5767_v12 = vld [vmem:[#allocation7 + $0x5b0] ss:$28 sps:$4 sm:$0xff]  }
 0x409   :  { %v2605_v17 = vmax.f32 %v2558_v13, 0.0  ;;  %v2562_v20 = vpop.f32.mrb[7].mxu1  ;;  %v5770_v13 = vld [vmem:[#allocation7 + $0x5b8] ss:$28 sps:$4 sm:$0xff]   ;;  %v5775_v14 = vld [vmem:[#allocation7 + $0x5ec] ss:$28 sps:$4 sm:$0xff]  }
 0x40a   :  { %v2606_v23 = vmax.f32 %v2560_v15, 0.0  ;;  %v5778_v15 = vld [vmem:[#allocation7 + $0x5f4] ss:$28 sps:$4 sm:$0xff]   ;;  %v5773_v16 = vld [vmem:[#allocation7 + $0x5e8] ss:$28 sps:$4 sm:$0xff]  }
 0x40b   :  { %v6250_v27 = vpack.c.bf16 %v2605_v17, %v2605_v17  ;;  %v5776_v17 = vld [vmem:[#allocation7 + $0x5f0] ss:$28 sps:$4 sm:$0xff]   ;;  %v5781_v20 = vld [vmem:[#allocation7 + $0x624] ss:$28 sps:$4 sm:$0xff]  }
 0x40c   :  { %v6248_v24 = vpack.c.bf16 %v2606_v23, %v2606_v23  ;;  %v5784_v23 = vld [vmem:[#allocation7 + $0x62c] ss:$28 sps:$4 sm:$0xff]  }
 0x40e   :  { %4090 = vmatprep.mubr.bf16.mxu1 %v6248_v24  ;;  %4172 = vmatprep.mubr.bf16.mxu0 %v6248_v24 }
 0x40f   :  { %4091 = vmatmul.mubr.bf16.vlgmr.msra.gmra.mrb[12].mxu1 %v6250_v27  ;;  %4173 = vmatmul.mubr.bf16.vlgmr.msra.gmra.mrb[8].mxu0 %v6250_v27 }
 0x410   :  { %4100 = vmatpush1.bf16.msra.mxu1 %v5707_v25  ;;  %4182 = vmatpush1.bf16.msra.mxu0 %v5710_v26  ;;  %v5779_v25 = vld [vmem:[#allocation7 + $0x620] ss:$28 sps:$4 sm:$0xff]   ;;  %v5782_v26 = vld [vmem:[#allocation7 + $0x628] ss:$28 sps:$4 sm:$0xff]  }
 0x411   :  { %4101 = vmatprep.subr.bf16.mxu1 %v5715_v28  ;;  %4183 = vmatprep.subr.bf16.mxu0 %v5718_v29  ;;  %v5787_v28 = vld [vmem:[#allocation7 + $0x65c] ss:$28 sps:$4 sm:$0xff]   ;;  %v5790_v29 = vld [vmem:[#allocation7 + $0x664] ss:$28 sps:$4 sm:$0xff]  }
 0x414   :  { %4102 = vmatpush1.bf16.msra.mxu1 %v5713_v30  ;;  %4184 = vmatpush1.bf16.msra.mxu0 %v5716_v22  ;;  %v5785_v30 = vld [vmem:[#allocation7 + $0x658] ss:$28 sps:$4 sm:$0xff]   ;;  %v5788_v22 = vld [vmem:[#allocation7 + $0x660] ss:$28 sps:$4 sm:$0xff]  }
 0x415   :  { %4103 = vmatprep.subr.bf16.mxu1 %v5721_v31  ;;  %4185 = vmatprep.subr.bf16.mxu0 %v5724_v32  ;;  %v2354_v31 = vrot.slane %v6242_v8, %v6219_v4  ;;  %v5793_v32 = vld [vmem:[#allocation7 + $0x694] ss:$28 sps:$4 sm:$0xff]  }
 0x416   :  { %v5805_v8 = vld [vmem:[#allocation7 + $0x14] ss:$28 sps:$4 sm:$0xff]  }
 0x418   :  { %4104 = vmatpush1.bf16.msra.mxu1 %v5719_v33  ;;  %4186 = vmatpush1.bf16.msra.mxu0 %v5722_v34  ;;  %v5796_v33 = vld [vmem:[#allocation7 + $0x69c] ss:$28 sps:$4 sm:$0xff]   ;;  %v5791_v34 = vld [vmem:[#allocation7 + $0x690] ss:$28 sps:$4 sm:$0xff]  }
 0x419   :  { %4105 = vmatprep.subr.bf16.mxu1 %v5727_v35  ;;  %4187 = vmatprep.subr.bf16.mxu0 %v5730_v36  ;;  %v5794_v35 = vld [vmem:[#allocation7 + $0x698] ss:$28 sps:$4 sm:$0xff]  }
 0x41c   :  { %4106 = vmatpush1.bf16.msra.mxu1 %v5725_v37  ;;  %4188 = vmatpush1.bf16.msra.mxu0 %v5728_v38  ;;  %v5799_v37 = vld [vmem:[#allocation7 + $0x6cc] ss:$28 sps:$4 sm:$0xff]   ;;  %v5802_v38 = vld [vmem:[#allocation7 + $0x6d4] ss:$28 sps:$4 sm:$0xff]  }
 0x41d   :  { %4107 = vmatprep.subr.bf16.mxu1 %v5733_v39  ;;  %4189 = vmatprep.subr.bf16.mxu0 %v5736_v40  ;;  %v5797_v39 = vld [vmem:[#allocation7 + $0x6c8] ss:$28 sps:$4 sm:$0xff]   ;;  %v5800_v40 = vld [vmem:[#allocation7 + $0x6d0] ss:$28 sps:$4 sm:$0xff]  }
 0x420   :  { %4108 = vmatpush1.bf16.msra.mxu1 %v5731_v41  ;;  %4190 = vmatpush1.bf16.msra.mxu0 %v5734_v42  ;;  %v5806_v42 = vld [vmem:[#allocation7 + $0x1d8] ss:$28 sps:$4 sm:$0xff]  }
 0x421   :  { %4109 = vmatprep.subr.bf16.mxu1 %v5739_v43  ;;  %4191 = vmatprep.subr.bf16.mxu0 %v5742_v44  ;;  %v5803_v43 = vld [vmem:[#allocation7 + $0x10] ss:$28 sps:$4 sm:$0xff]  }
 0x424   :  { %4110 = vmatpush1.bf16.msra.mxu1 %v5737_v45  ;;  %4192 = vmatpush1.bf16.msra.mxu0 %v5740_v46  ;;  %v5807_v45 = vld [vmem:[#allocation7 + $0x18] ss:$28 sps:$4 sm:$0xff]   ;;  %v5810_v46 = vld [vmem:[#allocation7 + $0x4c] ss:$28 sps:$4 sm:$0xff]  }
 0x425   :  { %4111 = vmatprep.subr.bf16.mxu1 %v5745_v47  ;;  %4193 = vmatprep.subr.bf16.mxu0 %v5748_v48  ;;  %v5811_v47 = vld [vmem:[#allocation7 + $0x210] ss:$28 sps:$4 sm:$0xff]   ;;  %v5808_v48 = vld [vmem:[#allocation7 + $0x48] ss:$28 sps:$4 sm:$0xff]  }
 0x426   :  { %v6258_v54 = vpop.f32.mrb[8].mxu1 }
 0x427   :  { %v2600_v55 = vpop.f32.mrb[9].mxu1  ;;  %v2599_v36 = vadd.f32 %v6258_v54, %v2354_v31  ;;  %v5820_v54 = vld [vmem:[#allocation7 + $0xbc] ss:$28 sps:$4 sm:$0xff]  }
 0x428   :  { %v2601_v56 = vadd.f32 %v2600_v55, %v2358_v49  ;;  %v2602_v57 = vpop.f32.mrb[10].mxu1  ;;  %4112 = vmatpush1.bf16.msra.mxu1 %v5743_v50  ;;  %4194 = vmatpush1.bf16.msra.mxu0 %v5746_v51  ;;  %v5812_v49 = vld [vmem:[#allocation7 + $0x50] ss:$28 sps:$4 sm:$0xff]   ;;  %v5815_v50 = vld [vmem:[#allocation7 + $0x84] ss:$28 sps:$4 sm:$0xff]  }
 0x429   :  { %v2603_v60 = vpop.f32.mrb[11].mxu1  ;;  %4113 = vmatprep.subr.bf16.mxu1 %v5751_v52  ;;  %4195 = vmatprep.subr.bf16.mxu0 %v5754_v53  ;;  %v2607_v41 = vmax.f32 %v2599_v36, 0.0  ;;  %v5816_v51 = vld [vmem:[#allocation7 + $0x248] ss:$28 sps:$4 sm:$0xff]   ;;  %v5813_v52 = vld [vmem:[#allocation7 + $0x80] ss:$28 sps:$4 sm:$0xff]  }
 0x42a   :  { %v2608_v63 = vmax.f32 %v2601_v56, 0.0  ;;  %v5817_v53 = vld [vmem:[#allocation7 + $0x88] ss:$28 sps:$4 sm:$0xff]   ;;  %v5821_v55 = vld [vmem:[#allocation7 + $0x280] ss:$28 sps:$4 sm:$0xff]  }
 0x42b   :  { %v6267_v44 = vpack.c.bf16 %v2607_v41, %v2607_v41  ;;  %v5818_v56 = vld [vmem:[#allocation7 + $0xb8] ss:$28 sps:$4 sm:$0xff]   ;;  %v5822_v57 = vld [vmem:[#allocation7 + $0xc0] ss:$28 sps:$4 sm:$0xff]   ;;  %v5863_v36 = vld [vmem:[#allocation7 + $0x2b0] ss:$28 sps:$4 sm:$0xff]  }
 0x42c   :  { %v6260_v0 = vpack.c.bf16 %v2608_v63, %v2608_v63  ;;  %4114 = vmatpush1.bf16.msra.mxu1 %v5749_v58  ;;  %4196 = vmatpush1.bf16.msra.mxu0 %v5752_v59  ;;  %v5825_v58 = vld [vmem:[#allocation7 + $0xf4] ss:$28 sps:$4 sm:$0xff]   ;;  %v5828_v63 = vld [vmem:[#allocation7 + $0x128] ss:$28 sps:$4 sm:$0xff]   ;;  %v5861_v31 = vld [vmem:[#allocation7 + $0x600] ss:$28 sps:$4 sm:$0xff]  }
 0x42d   :  { %4115 = vmatprep.subr.bf16.mxu1 %v5757_v61  ;;  %4197 = vmatprep.subr.bf16.mxu0 %v5760_v62  ;;  %v5823_v59 = vld [vmem:[#allocation7 + $0xf0] ss:$28 sps:$4 sm:$0xff]   ;;  %v5827_v60 = vld [vmem:[#allocation7 + $0xf8] ss:$28 sps:$4 sm:$0xff]  }
 0x42e   :  { %4131 = vmatprep.mubr.bf16.mxu1 %v6260_v0  ;;  %4213 = vmatprep.mubr.bf16.mxu0 %v6260_v0  ;;  %v5830_v61 = vld [vmem:[#allocation7 + $0x12c] ss:$28 sps:$4 sm:$0xff]  }
 0x42f   :  { %v5831_v62 = vld [vmem:[#allocation7 + $0x2f0] ss:$28 sps:$4 sm:$0xff]  }
 0x430   :  { %4116 = vmatpush1.bf16.msra.mxu1 %v5755_v1  ;;  %4198 = vmatpush1.bf16.msra.mxu0 %v5758_v2  ;;  %v5832_v1 = vld [vmem:[#allocation7 + $0x130] ss:$28 sps:$4 sm:$0xff]   ;;  %v5835_v2 = vld [vmem:[#allocation7 + $0x164] ss:$28 sps:$4 sm:$0xff]  }
 0x431   :  { %4117 = vmatprep.subr.bf16.mxu1 %v5763_v3  ;;  %4199 = vmatprep.subr.bf16.mxu0 %v5766_v5  ;;  %v5836_v3 = vld [vmem:[#allocation7 + $0x328] ss:$28 sps:$4 sm:$0xff]   ;;  %v5833_v5 = vld [vmem:[#allocation7 + $0x160] ss:$28 sps:$4 sm:$0xff]   ;;  %v5872_v41 = vld [vmem:[#allocation7 + $0x4b0] ss:$28 sps:$4 sm:$0xff]  }
 0x434   :  { %4118 = vmatpush1.bf16.msra.mxu1 %v5761_v6  ;;  %4200 = vmatpush1.bf16.msra.mxu0 %v5764_v7  ;;  %v5837_v6 = vld [vmem:[#allocation7 + $0x168] ss:$28 sps:$4 sm:$0xff]   ;;  %v5840_v7 = vld [vmem:[#allocation7 + $0x19c] ss:$28 sps:$4 sm:$0xff]  }
 0x435   :  { %4119 = vmatprep.subr.bf16.mxu1 %v5769_v9  ;;  %4201 = vmatprep.subr.bf16.mxu0 %v5772_v10  ;;  %v5841_v9 = vld [vmem:[#allocation7 + $0x360] ss:$28 sps:$4 sm:$0xff]   ;;  %v5838_v10 = vld [vmem:[#allocation7 + $0x198] ss:$28 sps:$4 sm:$0xff]  }
 0x438   :  { %4120 = vmatpush1.bf16.msra.mxu1 %v5767_v12  ;;  %4202 = vmatpush1.bf16.msra.mxu0 %v5770_v13  ;;  %v5842_v12 = vld [vmem:[#allocation7 + $0x1a0] ss:$28 sps:$4 sm:$0xff]   ;;  %v5845_v13 = vld [vmem:[#allocation7 + $0x1d4] ss:$28 sps:$4 sm:$0xff]  }
 0x439   :  { %4121 = vmatprep.subr.bf16.mxu1 %v5775_v14  ;;  %4203 = vmatprep.subr.bf16.mxu0 %v5778_v15  ;;  %v5846_v14 = vld [vmem:[#allocation7 + $0x558] ss:$28 sps:$4 sm:$0xff]   ;;  %v5843_v15 = vld [vmem:[#allocation7 + $0x1d0] ss:$28 sps:$4 sm:$0xff]  }
 0x43c   :  { %4122 = vmatpush1.bf16.msra.mxu1 %v5773_v16  ;;  %4204 = vmatpush1.bf16.msra.mxu0 %v5776_v17  ;;  %v5847_v16 = vld [vmem:[#allocation7 + $0x398] ss:$28 sps:$4 sm:$0xff]   ;;  %v5850_v17 = vld [vmem:[#allocation7 + $0x20c] ss:$28 sps:$4 sm:$0xff]  }
 0x43d   :  { %4123 = vmatprep.subr.bf16.mxu1 %v5781_v20  ;;  %4205 = vmatprep.subr.bf16.mxu0 %v5784_v23  ;;  %v5851_v20 = vld [vmem:[#allocation7 + $0x590] ss:$28 sps:$4 sm:$0xff]   ;;  %v5848_v23 = vld [vmem:[#allocation7 + $0x208] ss:$28 sps:$4 sm:$0xff]  }
 0x440   :  { %4124 = vmatpush1.bf16.msra.mxu1 %v5779_v25  ;;  %4206 = vmatpush1.bf16.msra.mxu0 %v5782_v26  ;;  %v5852_v25 = vld [vmem:[#allocation7 + $0x3d0] ss:$28 sps:$4 sm:$0xff]   ;;  %v5855_v26 = vld [vmem:[#allocation7 + $0x244] ss:$28 sps:$4 sm:$0xff]  }
 0x441   :  { %4125 = vmatprep.subr.bf16.mxu1 %v5787_v28  ;;  %4207 = vmatprep.subr.bf16.mxu0 %v5790_v29  ;;  %v5856_v28 = vld [vmem:[#allocation7 + $0x5c8] ss:$28 sps:$4 sm:$0xff]   ;;  %v5853_v29 = vld [vmem:[#allocation7 + $0x240] ss:$28 sps:$4 sm:$0xff]  }
 0x444   :  { %4126 = vmatpush1.bf16.msra.mxu1 %v5785_v30  ;;  %4208 = vmatpush1.bf16.msra.mxu0 %v5788_v22  ;;  %v5857_v30 = vld [vmem:[#allocation7 + $0x408] ss:$28 sps:$4 sm:$0xff]   ;;  %v5860_v22 = vld [vmem:[#allocation7 + $0x27c] ss:$28 sps:$4 sm:$0xff]  }
 0x445   :  { %4127 = vmatprep.subr.bf16.mxu1 %v5793_v32  ;;  %4209 = vmatprep.subr.bf16.mxu0 %v5796_v33  ;;  %v5858_v32 = vld [vmem:[#allocation7 + $0x278] ss:$28 sps:$4 sm:$0xff]   ;;  %v5862_v33 = vld [vmem:[#allocation7 + $0x440] ss:$28 sps:$4 sm:$0xff]  }
 0x448   :  { %4128 = vmatpush1.bf16.msra.mxu1 %v5791_v34  ;;  %4210 = vmatpush1.bf16.msra.mxu0 %v5794_v35  ;;  %v5865_v34 = vld [vmem:[#allocation7 + $0x2b4] ss:$28 sps:$4 sm:$0xff]  }
 0x449   :  { %4129 = vmatprep.subr.bf16.mxu1 %v5799_v37  ;;  %4211 = vmatprep.subr.bf16.mxu0 %v5802_v38  ;;  %v5866_v35 = vld [vmem:[#allocation7 + $0x638] ss:$28 sps:$4 sm:$0xff]   ;;  %v5870_v38 = vld [vmem:[#allocation7 + $0x2ec] ss:$28 sps:$4 sm:$0xff]  }
 0x44a   :  { %v5867_v37 = vld [vmem:[#allocation7 + $0x478] ss:$28 sps:$4 sm:$0xff]  }
 0x44c   :  { %4130 = vmatpush1.bf16.msra.mxu1 %v5797_v39  ;;  %4212 = vmatpush1.bf16.msra.mxu0 %v5800_v40  ;;  %v5871_v39 = vld [vmem:[#allocation7 + $0x670] ss:$28 sps:$4 sm:$0xff]   ;;  %v5868_v40 = vld [vmem:[#allocation7 + $0x2e8] ss:$28 sps:$4 sm:$0xff]  }
 0x44d   :  { %4222 = vmatprep.subr.bf16.mxu1 %v5805_v8  ;;  %5017 = vmatprep.subr.bf16.mxu0 %v5806_v42  ;;  %v5875_v8 = vld [vmem:[#allocation7 + $0x324] ss:$28 sps:$4 sm:$0xff]  }
 0x44e   :  { %v5876_v42 = vld [vmem:[#allocation7 + $0x6a8] ss:$28 sps:$4 sm:$0xff]  }
 0x44f   :  { %4132 = vmatmul.mubr.bf16.vlgmr.msra.gmra.mrb[12].mxu1 %v6267_v44  ;;  %4214 = vmatmul.mubr.bf16.vlgmr.msra.gmra.mrb[8].mxu0 %v6267_v44 }
 0x450   :  { %4223 = vmatpush1.bf16.msra.mxu1 %v5803_v43  ;;  %4254 = vmatprep.mubr.bf16.mxu1 %v6248_v24  ;;  %v5873_v43 = vld [vmem:[#allocation7 + $0x320] ss:$28 sps:$4 sm:$0xff]  }
 0x451   :  { %5018 = vmatpush3.bf16.msra.mxu0 %v5807_v45  ;;  %4336 = vmatprep.mubr.bf16.mxu0 %v6248_v24  ;;  %v5826_v24 = vld [vmem:[#allocation7 + $0x2b8] ss:$28 sps:$4 sm:$0xff]   ;;  %v5877_v45 = vld [vmem:[#allocation7 + $0x4e8] ss:$28 sps:$4 sm:$0xff]  }
 0x452   :  { %4224 = vmatprep.subr.bf16.mxu1 %v5810_v46  ;;  %5019 = vmatprep.subr.bf16.mxu0 %v5811_v47  ;;  %v5880_v46 = vld [vmem:[#allocation7 + $0x35c] ss:$28 sps:$4 sm:$0xff]  }
 0x453   :  { %v5881_v47 = vld [vmem:[#allocation7 + $0x6e0] ss:$28 sps:$4 sm:$0xff]  }
 0x454   :  { %4225 = vmatpush1.bf16.msra.mxu1 %v5808_v48  ;;  %v5878_v48 = vld [vmem:[#allocation7 + $0x358] ss:$28 sps:$4 sm:$0xff]  }
 0x455   :  { %5020 = vmatpush3.bf16.msra.mxu0 %v5812_v49  ;;  %4226 = vmatprep.subr.bf16.mxu1 %v5815_v50  ;;  %v5882_v49 = vld [vmem:[#allocation7 + $0x520] ss:$28 sps:$4 sm:$0xff]   ;;  %v5885_v50 = vld [vmem:[#allocation7 + $0x394] ss:$28 sps:$4 sm:$0xff]  }
 0x456   :  { %5021 = vmatprep.subr.bf16.mxu0 %v5816_v51  ;;  %v5883_v51 = vld [vmem:[#allocation7 + $0x390] ss:$28 sps:$4 sm:$0xff]  }
 0x458   :  { %4227 = vmatpush1.bf16.msra.mxu1 %v5813_v52  ;;  %v5888_v52 = vld [vmem:[#allocation7 + $0x3cc] ss:$28 sps:$4 sm:$0xff]  }
 0x459   :  { %5022 = vmatpush3.bf16.msra.mxu0 %v5817_v53  ;;  %4228 = vmatprep.subr.bf16.mxu1 %v5820_v54  ;;  %v5886_v53 = vld [vmem:[#allocation7 + $0x3c8] ss:$28 sps:$4 sm:$0xff]  }
 0x45a   :  { %5023 = vmatprep.subr.bf16.mxu0 %v5821_v55  ;;  %v5891_v54 = vld [vmem:[#allocation7 + $0x404] ss:$28 sps:$4 sm:$0xff]  }
 0x45b   :  { %v5889_v55 = vld [vmem:[#allocation7 + $0x400] ss:$28 sps:$4 sm:$0xff]  }
 0x45c   :  { %4229 = vmatpush1.bf16.msra.mxu1 %v5818_v56  ;;  %v5894_v56 = vld [vmem:[#allocation7 + $0x43c] ss:$28 sps:$4 sm:$0xff]  }
 0x45d   :  { %5024 = vmatpush3.bf16.msra.mxu0 %v5822_v57  ;;  %4230 = vmatprep.subr.bf16.mxu1 %v5825_v58  ;;  %v5892_v57 = vld [vmem:[#allocation7 + $0x438] ss:$28 sps:$4 sm:$0xff]  }
 0x45e   :  { %5025 = vmatprep.subr.bf16.mxu0 %v5826_v24  ;;  %v5897_v58 = vld [vmem:[#allocation7 + $0x474] ss:$28 sps:$4 sm:$0xff]  }
 0x45f   :  { %v5895_v24 = vld [vmem:[#allocation7 + $0x470] ss:$28 sps:$4 sm:$0xff]  }
 0x460   :  { %4231 = vmatpush1.bf16.msra.mxu1 %v5823_v59  ;;  %v5898_v59 = vld [vmem:[#allocation7 + $0x4a8] ss:$28 sps:$4 sm:$0xff]  }
 0x461   :  { %5026 = vmatpush3.bf16.msra.mxu0 %v5827_v60  ;;  %4232 = vmatprep.subr.bf16.mxu1 %v5830_v61  ;;  %v5903_v60 = vld [vmem:[#allocation7 + $0x4e4] ss:$28 sps:$4 sm:$0xff]   ;;  %v5906_v61 = vld [vmem:[#allocation7 + $0x51c] ss:$28 sps:$4 sm:$0xff]  }
 0x462   :  { %5027 = vmatprep.subr.bf16.mxu0 %v5831_v62  ;;  %v5904_v62 = vld [vmem:[#allocation7 + $0x518] ss:$28 sps:$4 sm:$0xff]  }
 0x464   :  { %4233 = vmatpush1.bf16.msra.mxu1 %v5828_v63  ;;  %v5909_v63 = vld [vmem:[#allocation7 + $0x554] ss:$28 sps:$4 sm:$0xff]  }
 0x465   :  { %5028 = vmatpush3.bf16.msra.mxu0 %v5832_v1  ;;  %4234 = vmatprep.subr.bf16.mxu1 %v5835_v2  ;;  %v5907_v1 = vld [vmem:[#allocation7 + $0x550] ss:$28 sps:$4 sm:$0xff]  }
 0x466   :  { %5029 = vmatprep.subr.bf16.mxu0 %v5836_v3  ;;  %v5912_v2 = vld [vmem:[#allocation7 + $0x58c] ss:$28 sps:$4 sm:$0xff]  }
 0x467   :  { %v5910_v3 = vld [vmem:[#allocation7 + $0x588] ss:$28 sps:$4 sm:$0xff]  }
 0x468   :  { %4235 = vmatpush1.bf16.msra.mxu1 %v5833_v5  ;;  %v5915_v5 = vld [vmem:[#allocation7 + $0x5c4] ss:$28 sps:$4 sm:$0xff]  }
 0x469   :  { %5030 = vmatpush3.bf16.msra.mxu0 %v5837_v6  ;;  %4236 = vmatprep.subr.bf16.mxu1 %v5840_v7  ;;  %v5913_v6 = vld [vmem:[#allocation7 + $0x5c0] ss:$28 sps:$4 sm:$0xff]  }
 0x46a   :  { %5031 = vmatprep.subr.bf16.mxu0 %v5841_v9  ;;  %v5918_v7 = vld [vmem:[#allocation7 + $0x5fc] ss:$28 sps:$4 sm:$0xff]  }
 0x46b   :  { %v5916_v9 = vld [vmem:[#allocation7 + $0x5f8] ss:$28 sps:$4 sm:$0xff]  }
 0x46c   :  { %4237 = vmatpush1.bf16.msra.mxu1 %v5838_v10  ;;  %v5921_v10 = vld [vmem:[#allocation7 + $0x634] ss:$28 sps:$4 sm:$0xff]  }
 0x46d   :  { %5032 = vmatpush3.bf16.msra.mxu0 %v5842_v12  ;;  %4238 = vmatprep.subr.bf16.mxu1 %v5845_v13  ;;  %v5919_v12 = vld [vmem:[#allocation7 + $0x630] ss:$28 sps:$4 sm:$0xff]  }
 0x46e   :  { %5039 = vmatprep.subr.bf16.mxu0 %v5846_v14  ;;  %v5924_v13 = vld [vmem:[#allocation7 + $0x66c] ss:$28 sps:$4 sm:$0xff]  }
 0x46f   :  { %v5922_v14 = vld [vmem:[#allocation7 + $0x668] ss:$28 sps:$4 sm:$0xff]  }
 0x470   :  { %4337 = vmatmul.mubr.bf16.vlgmr.msra.gmra.mrb[12].mxu0 %v6250_v27  ;;  %4239 = vmatpush1.bf16.msra.mxu1 %v5843_v15  ;;  %v5927_v15 = vld [vmem:[#allocation7 + $0x6a4] ss:$28 sps:$4 sm:$0xff]  }
 0x471   :  { %5040 = vmatpush3.bf16.msra.mxu0 %v5847_v16  ;;  %4376 = vmatprep.mubr.bf16.mxu0 %v6260_v0  ;;  %v5925_v16 = vld [vmem:[#allocation7 + $0x6a0] ss:$28 sps:$4 sm:$0xff]  }
 0x472   :  { %4240 = vmatprep.subr.bf16.mxu1 %v5850_v17  ;;  %5041 = vmatprep.subr.bf16.mxu0 %v5851_v20  ;;  %v5930_v17 = vld [vmem:[#allocation7 + $0x6dc] ss:$28 sps:$4 sm:$0xff]  }
 0x473   :  { %v5928_v20 = vld [vmem:[#allocation7 + $0x6d8] ss:$28 sps:$4 sm:$0xff]  }
 0x474   :  { %4241 = vmatpush1.bf16.msra.mxu1 %v5848_v23  ;;  %v6282_v23 = vld [vmem:[%s6318_s8] sm:$0xff] }
 0x475   :  { %5042 = vmatpush3.bf16.msra.mxu0 %v5852_v25  ;;  %4242 = vmatprep.subr.bf16.mxu1 %v5855_v26  ;;  %v2874_v25 = vrot.slane %v6282_v23, %v6197_v19  ;;  %v2882_v26 = vrot.slane %v6282_v23, %v6219_v4 }
 0x476   :  { %5043 = vmatprep.subr.bf16.mxu0 %v5856_v28  ;;  %v2878_v28 = vrot.slane %v6282_v23, %v6205_v21 }
 0x478   :  { %4243 = vmatpush1.bf16.msra.mxu1 %v5853_v29  ;;  %v2886_v29 = vrot.slane %v6282_v23, %v6208_v11 }
 0x479   :  { %5044 = vmatpush3.bf16.msra.mxu0 %v5857_v30  ;;  %4244 = vmatprep.subr.bf16.mxu1 %v5860_v22 }
 0x47a   :  { %5045 = vmatprep.subr.bf16.mxu0 %v5861_v31 }
 0x47c   :  { %4245 = vmatpush1.bf16.msra.mxu1 %v5858_v32 }
 0x47d   :  { %5046 = vmatpush3.bf16.msra.mxu0 %v5862_v33  ;;  %4246 = vmatprep.subr.bf16.mxu1 %v5865_v34 }
 0x47e   :  { %5047 = vmatprep.subr.bf16.mxu0 %v5866_v35 }
 0x480   :  { %4247 = vmatpush1.bf16.msra.mxu1 %v5863_v36 }
 0x481   :  { %5048 = vmatpush3.bf16.msra.mxu0 %v5867_v37  ;;  %4248 = vmatprep.subr.bf16.mxu1 %v5870_v38 }
 0x482   :  { %5049 = vmatprep.subr.bf16.mxu0 %v5871_v39 }
 0x484   :  { %4249 = vmatpush1.bf16.msra.mxu1 %v5868_v40 }
 0x485   :  { %5050 = vmatpush3.bf16.msra.mxu0 %v5872_v41  ;;  %4250 = vmatprep.subr.bf16.mxu1 %v5875_v8 }
 0x486   :  { %5051 = vmatprep.subr.bf16.mxu0 %v5876_v42 }
 0x488   :  { %4251 = vmatpush1.bf16.msra.mxu1 %v5873_v43 }
 0x489   :  { %5052 = vmatpush3.bf16.msra.mxu0 %v5877_v45  ;;  %4252 = vmatprep.subr.bf16.mxu1 %v5880_v46 }
 0x48a   :  { %5053 = vmatprep.subr.bf16.mxu0 %v5881_v47 }
 0x48c   :  { %4253 = vmatpush1.bf16.msra.mxu1 %v5878_v48 }
 0x48d   :  { %5054 = vmatpush3.bf16.msra.mxu0 %v5882_v49  ;;  %4263 = vmatprep.subr.bf16.mxu1 %v5885_v50 }
 0x48f   :  { %4255 = vmatmul.mubr.bf16.vlgmr.msra.gmra.mrb[16].mxu1 %v6250_v27  ;;  %v5900_v27 = vld [vmem:[#allocation7 + $0x4ac] ss:$28 sps:$4 sm:$0xff]  }
 0x490   :  { %4377 = vmatmul.mubr.bf16.vlgmr.msra.gmra.mrb[16].mxu0 %v6267_v44  ;;  %4264 = vmatpush1.bf16.msra.mxu1 %v5883_v51 }
 0x491   :  { %4295 = vmatprep.mubr.bf16.mxu1 %v6260_v0  ;;  %4265 = vmatprep.subr.bf16.mxu1 %v5888_v52  ;;  %v5901_v0 = vld [vmem:[#allocation7 + $0x4e0] ss:$28 sps:$4 sm:$0xff]  }
 0x494   :  { %4266 = vmatpush1.bf16.msra.mxu1 %v5886_v53 }
 0x495   :  { %4267 = vmatprep.subr.bf16.mxu1 %v5891_v54 }
 0x498   :  { %4268 = vmatpush1.bf16.msra.mxu1 %v5889_v55 }
 0x499   :  { %4269 = vmatprep.subr.bf16.mxu1 %v5894_v56 }
 0x49c   :  { %4270 = vmatpush1.bf16.msra.mxu1 %v5892_v57 }
 0x49d   :  { %4271 = vmatprep.subr.bf16.mxu1 %v5897_v58 }
 0x4a0   :  { %4272 = vmatpush1.bf16.msra.mxu1 %v5895_v24  ;;  %v2897_v24 = vsub.s32 6, %v6194_v18 }
 0x4a1   :  { %4273 = vmatprep.subr.bf16.mxu1 %v5900_v27 }
 0x4a2   :  { %v2898_v27 = vrot.slane %v6282_v23, %v2897_v24 }
 0x4a4   :  { %4274 = vmatpush1.bf16.msra.mxu1 %v5898_v59 }
 0x4a5   :  { %4275 = vmatprep.subr.bf16.mxu1 %v5903_v60 }
 0x4a8   :  { %4276 = vmatpush1.bf16.msra.mxu1 %v5901_v0 }
 0x4a9   :  { %4277 = vmatprep.subr.bf16.mxu1 %v5906_v61 }
 0x4ac   :  { %4278 = vmatpush1.bf16.msra.mxu1 %v5904_v62 }
 0x4ad   :  { %4279 = vmatprep.subr.bf16.mxu1 %v5909_v63 }
 0x4b0   :  { %4280 = vmatpush1.bf16.msra.mxu1 %v5907_v1 }
 0x4b1   :  { %4281 = vmatprep.subr.bf16.mxu1 %v5912_v2 }
 0x4b4   :  { %4282 = vmatpush1.bf16.msra.mxu1 %v5910_v3 }
 0x4b5   :  { %4283 = vmatprep.subr.bf16.mxu1 %v5915_v5 }
 0x4b8   :  { %4284 = vmatpush1.bf16.msra.mxu1 %v5913_v6 }
 0x4b9   :  { %4285 = vmatprep.subr.bf16.mxu1 %v5918_v7 }
 0x4bc   :  { %4286 = vmatpush1.bf16.msra.mxu1 %v5916_v9  ;;  %v2889_v9 = vsub.s32 4, %v6194_v18 }
 0x4bd   :  { %4287 = vmatprep.subr.bf16.mxu1 %v5921_v10  ;;  %v2893_v10 = vsub.s32 5, %v6194_v18 }
 0x4c0   :  { %4288 = vmatpush1.bf16.msra.mxu1 %v5919_v12  ;;  %v2890_v12 = vrot.slane %v6282_v23, %v2889_v9 }
 0x4c1   :  { %4289 = vmatprep.subr.bf16.mxu1 %v5924_v13  ;;  %v2894_v13 = vrot.slane %v6282_v23, %v2893_v10 }
 0x4c4   :  { %4290 = vmatpush1.bf16.msra.mxu1 %v5922_v14 }
 0x4c5   :  { %4291 = vmatprep.subr.bf16.mxu1 %v5927_v15 }
 0x4c8   :  { %4292 = vmatpush1.bf16.msra.mxu1 %v5925_v16 }
 0x4c9   :  { %4293 = vmatprep.subr.bf16.mxu1 %v5930_v17 }
 0x4cc   :  { %4294 = vmatpush1.bf16.msra.mxu1 %v5928_v20 }
 0x4cf   :  { %4296 = vmatmul.mubr.bf16.vlgmr.msra.gmra.mrb[16].mxu1 %v6267_v44 }
 0x522   :  { %v4133_v30 = vpop.f32.mrb[12].mxu1  ;;  %v4215_v22 = vpop.f32.mrb[8].mxu0 }
 0x523   :  { %v5067_v44 = vadd.f32 %v4133_v30, %v2874_v25  ;;  %v5069_v31 = vadd.f32 %v4215_v22, %v2882_v26  ;;  %v4135_v32 = vpop.f32.mrb[13].mxu1  ;;  %v4217_v33 = vpop.f32.mrb[9].mxu0 }
 0x524   :  { %v5068_v34 = vadd.f32 %v4135_v32, %v2878_v28  ;;  %v5070_v35 = vadd.f32 %v4217_v33, %v2886_v29  ;;  %v4137_v36 = vpop.f32.mrb[14].mxu1  ;;  %v4219_v37 = vpop.f32.mrb[10].mxu0 }
 0x525   :  { %v4384_v19 = vmul.f32 0.5, %v5067_v44  ;;  %v4386_v38 = vmul.f32 0.5, %v5069_v31  ;;  %v4138_v39 = vpop.f32.mrb[15].mxu1  ;;  %v4220_v4 = vpop.f32.mrb[11].mxu0 }
 0x526   :  { %v4385_v40 = vmul.f32 0.5, %v5068_v34  ;;  %v4387_v41 = vmul.f32 0.5, %v5070_v35 }
 0x527   :  { %5933 = vtanh.f32 %v4384_v19 }
 0x528   :  { %5935 = vtanh.f32 %v4386_v38 }
 0x529   :  { %5937 = vtanh.f32 %v4385_v40 }
 0x52a   :  { %5939 = vtanh.f32 %v4387_v41 }
 0x531   :  { %v5934_v21 = vpop.eup %5933 }
 0x532   :  { %v5936_v11 = vpop.eup %5935  ;;  %v4398_v8 = vmul.f32 0.5, %v5934_v21 }
 0x533   :  { %v5938_v42 = vpop.eup %5937  ;;  %v4400_v43 = vmul.f32 0.5, %v5936_v11 }
 0x534   :  { %v5940_v45 = vpop.eup %5939  ;;  %v4405_v46 = vadd.f32 0.5, %v4398_v8  ;;  %v4399_v47 = vmul.f32 0.5, %v5938_v42 }
 0x535   :  { %v4407_v48 = vadd.f32 0.5, %v4400_v43  ;;  %v4401_v49 = vmul.f32 0.5, %v5940_v45 }
 0x536   :  { %v4406_v50 = vadd.f32 0.5, %v4399_v47 }
 0x537   :  { %v4408_v51 = vadd.f32 0.5, %v4401_v49 }
 0x538   :  { %v5013_v52 = vpack.c.bf16 %v4406_v50, %v4405_v46 }
 0x539   :  { %v5014_v53 = vpack.c.bf16 %v4408_v51, %v4407_v48 }
 0x53a   :  { %4441 = vst [vmem:[%s6320_s10] sm:$0xff] %v5013_v52 }
 0x53b   :  { %4442 = vst [vmem:[%s6320_s10 + $0x8] sm:$0xff] %v5014_v53 }
 0x543   :  { %v5033_v54 = vpop.f32.mrb[12].mxu0 }
 0x544   :  { %v5034_v55 = vpop.f32.mrb[13].mxu0 }
 0x545   :  { %v5035_v56 = vadd.f32 %v5034_v55, %v5033_v54  ;;  %v5036_v57 = vpop.f32.mrb[14].mxu0 }
 0x546   :  { %v5037_v58 = vpop.f32.mrb[15].mxu0 }
 0x547   :  { %v4339_v0 = vadd.f32 %v5035_v56, %v2898_v27 }
 0x563   :  { %v5055_v59 = vpop.f32.mrb[16].mxu0 }
 0x564   :  { %v5056_v60 = vpop.f32.mrb[17].mxu0 }
 0x565   :  { %v5057_v61 = vadd.f32 %v5056_v60, %v5055_v59  ;;  %v5058_v62 = vpop.f32.mrb[18].mxu0 }
 0x566   :  { %v5059_v63 = vpop.f32.mrb[19].mxu0 }
 0x567   :  { %v4379_v1 = vadd.f32 %v5057_v61, %v4339_v0 }
 0x569   :  { %v4390_v2 = vmul.f32 0.5, %v4379_v1 }
 0x56b   :  { %5941 = vtanh.f32 %v4390_v2 }
 0x575   :  { %v5942_v3 = vpop.eup %5941 }
 0x576   :  { %v4404_v5 = vmul.f32 0.5, %v5942_v3 }
 0x578   :  { %v4411_v6 = vadd.f32 0.5, %v4404_v5 }
 0x57a   :  { %v5016_v7 = vpack.c.bf16 %v4411_v6, %v4411_v6 }
 0x57c   :  { %4444 = vst [vmem:[%s6320_s10 + $0x18] sm:$0xf] %v5016_v7 }
 0x5a2   :  { %v4297_v14 = vpop.f32.mrb[16].mxu1 }
 0x5a3   :  { %v5071_v15 = vadd.f32 %v4297_v14, %v2890_v12  ;;  %v4299_v16 = vpop.f32.mrb[17].mxu1 }
 0x5a4   :  { %v5072_v17 = vadd.f32 %v4299_v16, %v2894_v13  ;;  %v4301_v20 = vpop.f32.mrb[18].mxu1 }
 0x5a5   :  { %v4388_v25 = vmul.f32 0.5, %v5071_v15  ;;  %v4302_v26 = vpop.f32.mrb[19].mxu1 }
 0x5a6   :  { %v4389_v28 = vmul.f32 0.5, %v5072_v17 }
 0x5a7   :  { %5943 = vtanh.f32 %v4388_v25 }
 0x5a8   :  { %5945 = vtanh.f32 %v4389_v28 }
 0x5b1   :  { %v5944_v29 = vpop.eup %5943 }
 0x5b2   :  { %v5946_v30 = vpop.eup %5945  ;;  %v4402_v22 = vmul.f32 0.5, %v5944_v29 }
 0x5b3   :  { %v4403_v44 = vmul.f32 0.5, %v5946_v30 }
 0x5b4   :  { %v4409_v31 = vadd.f32 0.5, %v4402_v22 }
 0x5b5   :  { %v4410_v18 = vadd.f32 0.5, %v4403_v44 }
 0x5b7   :  { %v5015_v32 = vpack.c.bf16 %v4410_v18, %v4409_v31 }
 0x5b9   :  { %4443 = vst [vmem:[%s6320_s10 + $0x10] sm:$0xff] %v5015_v32 }
 0x5ba   :  { %4455 = vsyncpa [#allocation3], 1 }
 0x5bb   :  { %4456 = vsyncpa [#allocation5], 1 }
 0x5bc   :  { %4457 = vsyncpa [#allocation8], 1 }

</bundles_post_ra>
